<compile_context>
chip_gen: v7x
topology: tpu7x:2x2x1
jax: 0.10.0
libtpu: 0.0.40
codegen_flags: <defaults>
</compile_context>

<pallas_src>
import functools

import jax
import jax.numpy as jnp
from jax.experimental import pallas as pl
from jax.experimental.pallas import tpu as pltpu


def _round_up(n, m):
    return ((n + m - 1) // m) * m


def _default_vmem_limit():
    # ~60% of per-core physical VMEM (128 MiB on v5e/v6e -> ~77 MiB, capped at
    # 64 MiB; 64 MiB on v7x -> ~38 MiB).  Fallback assumes the small (v7x) chip.
    try:
        cap = pltpu.get_tpu_info().vmem_capacity_bytes
    except Exception:
        cap = 64 * 1024 * 1024
    return min(int(cap * 0.6), 64 * 1024 * 1024)


VMEM_LIMIT = _default_vmem_limit()


# ----------------------------------------------------------------------------
# Activation (in-kernel)
# ----------------------------------------------------------------------------
def _gelu(x):
    # TODO(synk): PyTorch F.gelu default is the exact erf form; tanh approximation
    # is used so the transcendental lowers to the TPU EUP (diff ~1e-3).
    c = 0.7978845608028654  # sqrt(2/pi)
    return 0.5 * x * (1.0 + jnp.tanh(c * (x + 0.044715 * x * x * x)))


# ----------------------------------------------------------------------------
# Tile-size helpers
# ----------------------------------------------------------------------------
def _pick_n_tile(N, cap=2048):
    """Lane-dense tile along the flattened-spatial axis; >=2 grid steps for v7x."""
    tn = min(cap, _round_up(N, 128))
    if _round_up(N, tn) // tn < 2 and tn > 128:
        tn = _round_up((N + 1) // 2, 128)
    return tn


def _pick_cmul_chunks(B, Ci_pad, Co, M_pad, vmem_budget):
    """Pick (m_chunk, ci_chunk) so blocks fit VMEM and accumulators fit vregs."""
    for m_chunk in (1024, 512, 256, 128):
        if M_pad % m_chunk:
            continue
        if Co * m_chunk > 16384:        # 2*Co*m_chunk f32 accumulators <= ~128 KiB
            continue
        for ci_chunk in sorted({Ci_pad, 32, 16, 8}, reverse=True):
            if ci_chunk > Ci_pad or Ci_pad % ci_chunk:
                continue
            a_bytes = 2 * 2 * B * ci_chunk * m_chunk * 4          # r+i, double buffered
            w_bytes = 2 * 2 * ci_chunk * Co * m_chunk * 4         # r+i, double buffered
            o_bytes = 2 * B * Co * m_chunk * 4                    # resident r+i outputs
            if a_bytes + w_bytes + o_bytes <= vmem_budget:
                return m_chunk, ci_chunk
    return 128, min(8, Ci_pad)


# ----------------------------------------------------------------------------
# Pallas kernel 1: channel-major pointwise linear  y = act(W @ x + b [+ res])
# Covers fc0 and the 1x1 Conv1d branch (fused with residual add + activation).
# Output block is (Cout, tn) with tn a multiple of 128 -> lane-dense stores.
# ----------------------------------------------------------------------------
def _linear_kernel(x_ref, w_ref, b_ref, o_ref, *, act):
    y = jnp.dot(w_ref[...].astype(jnp.bfloat16), x_ref[...].astype(jnp.bfloat16),
                preferred_element_type=jnp.float32)
    y = y + b_ref[...]
    if act:
        y = _gelu(y)
    o_ref[...] = y.astype(o_ref.dtype)


def _linear_residual_kernel(x_ref, w_ref, b_ref, r_ref, o_ref, *, act):
    y = jnp.dot(w_ref[...].astype(jnp.bfloat16), x_ref[...].astype(jnp.bfloat16),
                preferred_element_type=jnp.float32)
    y = y + b_ref[...] + r_ref[...]
    if act:
        y = _gelu(y)
    o_ref[...] = y.astype(o_ref.dtype)


def pointwise_linear(x2d, w, b, residual=None, act=False, tn_cap=2048):
    """x2d: (Cin, N) channel-major, w: (Cout, Cin), b: (Cout,), residual: (Cout, N)."""
    Cin, N = x2d.shape
    Cout = w.shape[0]

    Cout_p = _round_up(Cout, 8)
    if Cout_p != Cout:
        w = jnp.pad(w, ((0, Cout_p - Cout), (0, 0)))
        b = jnp.pad(b, ((0, Cout_p - Cout),))
        if residual is not None:
            residual = jnp.pad(residual, ((0, Cout_p - Cout), (0, 0)))

    tn = _pick_n_tile(N, tn_cap)
    Np = _round_up(N, tn)
    if Np != N:
        x2d = jnp.pad(x2d, ((0, 0), (0, Np - N)))
        if residual is not None:
            residual = jnp.pad(residual, ((0, 0), (0, Np - N)))
    grid = (Np // tn,)

    in_specs = [
        pl.BlockSpec((Cin, tn), lambda i: (0, i)),
        pl.BlockSpec((Cout_p, Cin), lambda i: (0, 0)),
        pl.BlockSpec((Cout_p, 1), lambda i: (0, 0)),
    ]
    args = [x2d, w, b.reshape(Cout_p, 1)]
    if residual is not None:
        in_specs.append(pl.BlockSpec((Cout_p, tn), lambda i: (0, i)))
        args.append(residual)
        kernel = functools.partial(_linear_residual_kernel, act=act)
    else:
        kernel = functools.partial(_linear_kernel, act=act)

    out = pl.pallas_call(
        kernel,
        out_shape=jax.ShapeDtypeStruct((Cout_p, Np), jnp.float32),
        grid=grid,
        in_specs=in_specs,
        out_specs=pl.BlockSpec((Cout_p, tn), lambda i: (0, i)),
        compiler_params=pltpu.CompilerParams(
            dimension_semantics=("parallel",),
            vmem_limit_bytes=VMEM_LIMIT,
        ),
    )(*args)
    return out[:Cout, :N]


# ----------------------------------------------------------------------------
# Pallas kernel 2: fused fc1 -> GELU -> fc2 (channel-major; intermediate on-chip)
# ----------------------------------------------------------------------------
def _mlp_kernel(x_ref, w1_ref, b1_ref, w2_ref, b2_ref, o_ref):
    h = jnp.dot(w1_ref[...].astype(jnp.bfloat16), x_ref[...].astype(jnp.bfloat16),
                preferred_element_type=jnp.float32)
    h = _gelu(h + b1_ref[...])
    y = jnp.dot(w2_ref[...].astype(jnp.bfloat16), h.astype(jnp.bfloat16),
                preferred_element_type=jnp.float32) + b2_ref[...]
    o_ref[...] = y.astype(o_ref.dtype)


def fused_mlp(x2d, w1, b1, w2, b2, tn_cap=2048):
    """x2d: (Cin, N); w1: (Ch, Cin); w2: (Cout, Ch). Returns (Cout, N)."""
    Cin, N = x2d.shape
    Ch = w1.shape[0]
    Cout = w2.shape[0]

    Cout_p = _round_up(Cout, 8)
    if Cout_p != Cout:
        w2 = jnp.pad(w2, ((0, Cout_p - Cout), (0, 0)))
        b2 = jnp.pad(b2, ((0, Cout_p - Cout),))

    tn = _pick_n_tile(N, tn_cap)
    Np = _round_up(N, tn)
    if Np != N:
        x2d = jnp.pad(x2d, ((0, 0), (0, Np - N)))

    out = pl.pallas_call(
        _mlp_kernel,
        out_shape=jax.ShapeDtypeStruct((Cout_p, Np), jnp.float32),
        grid=(Np // tn,),
        in_specs=[
            pl.BlockSpec((Cin, tn), lambda i: (0, i)),
            pl.BlockSpec((Ch, Cin), lambda i: (0, 0)),
            pl.BlockSpec((Ch, 1), lambda i: (0, 0)),
            pl.BlockSpec((Cout_p, Ch), lambda i: (0, 0)),
            pl.BlockSpec((Cout_p, 1), lambda i: (0, 0)),
        ],
        out_specs=pl.BlockSpec((Cout_p, tn), lambda i: (0, i)),
        compiler_params=pltpu.CompilerParams(
            dimension_semantics=("parallel",),
            vmem_limit_bytes=VMEM_LIMIT,
        ),
    )(x2d, w1, b1.reshape(Ch, 1), w2, b2.reshape(Cout_p, 1))
    return out[:Cout, :N]


# ----------------------------------------------------------------------------
# Pallas kernel 3: complex mode mixing (einsum 'bixyz,ioxyz->boxyz', complex)
# All 4 spectral corners in one call; batch folded into the BLOCK so weight
# tiles are fetched from HBM exactly once.  grid = (corner, M-chunk, Ci-chunk).
# ----------------------------------------------------------------------------
def _cmul_kernel(ar_ref, ai_ref, wr_ref, wi_ref, or_ref, oi_ref, *, batch, ci_chunk):
    @pl.when(pl.program_id(2) == 0)
    def _():
        or_ref[...] = jnp.zeros_like(or_ref)
        oi_ref[...] = jnp.zeros_like(oi_ref)

    unroll = min(ci_chunk, 8)
    for b in range(batch):                       # static; weights re-read from VMEM only
        def body(c, carry):
            acc_r, acc_i = carry
            a_r = ar_ref[0, b, pl.ds(c, 1), :]   # (1, mc) row, broadcast over Co sublanes
            a_i = ai_ref[0, b, pl.ds(c, 1), :]
            w_r = wr_ref[0, c]                   # (Co, mc)
            w_i = wi_ref[0, c]
            return (acc_r + a_r * w_r - a_i * w_i,
                    acc_i + a_r * w_i + a_i * w_r)

        acc_r, acc_i = jax.lax.fori_loop(
            0, ci_chunk, body, (or_ref[0, b], oi_ref[0, b]), unroll=unroll)
        or_ref[0, b] = acc_r
        oi_ref[0, b] = acc_i


def compl_mul_corners(ar, ai, wr_stack, wi_stack):
    """ar/ai: (4, B, Ci_pad, M_pad) f32; wr/wi: (4, Ci_pad, Co, M_pad) f32.
    Returns (out_r, out_i), each (4, B, Co, M_pad) f32."""
    _, B, Ci_pad, M_pad = ar.shape
    Co = wr_stack.shape[2]

    m_chunk, ci_chunk = _pick_cmul_chunks(B, Ci_pad, Co, M_pad, VMEM_LIMIT // 2)
    n_m = M_pad // m_chunk
    n_c = Ci_pad // ci_chunk

    kernel = functools.partial(_cmul_kernel, batch=B, ci_chunk=ci_chunk)
    out_r, out_i = pl.pallas_call(
        kernel,
        out_shape=(
            jax.ShapeDtypeStruct((4, B, Co, M_pad), jnp.float32),
            jax.ShapeDtypeStruct((4, B, Co, M_pad), jnp.float32),
        ),
        grid=(4, n_m, n_c),
        in_specs=[
            pl.BlockSpec((1, B, ci_chunk, m_chunk), lambda c, m, ic: (c, 0, ic, m)),
            pl.BlockSpec((1, B, ci_chunk, m_chunk), lambda c, m, ic: (c, 0, ic, m)),
            pl.BlockSpec((1, ci_chunk, Co, m_chunk), lambda c, m, ic: (c, ic, 0, m)),
            pl.BlockSpec((1, ci_chunk, Co, m_chunk), lambda c, m, ic: (c, ic, 0, m)),
        ],
        out_specs=(
            pl.BlockSpec((1, B, Co, m_chunk), lambda c, m, ic: (c, 0, 0, m)),
            pl.BlockSpec((1, B, Co, m_chunk), lambda c, m, ic: (c, 0, 0, m)),
        ),
        compiler_params=pltpu.CompilerParams(
            dimension_semantics=("parallel", "parallel", "arbitrary"),
            vmem_limit_bytes=VMEM_LIMIT,
        ),
    )(ar, ai, wr_stack, wi_stack)
    return out_r, out_i


# ----------------------------------------------------------------------------
# SpectralConv3d (FFT in plain JAX, mode mixing in Pallas) — (C, B, X, Y, Z) layout
# ----------------------------------------------------------------------------
def spectral_conv3d(h, wr_stack, wi_stack, m1, m2, m3):
    # h: (Ci, B, sx, sy, sz) float32; m1/m2/m3 are static Python ints.
    Ci, B, sx, sy, sz = h.shape
    _, Ci_pad, Co, M_pad = wr_stack.shape
    M = m1 * m2 * m3

    # TODO(synk): 3-D rfftn / irfftn have no Pallas TPU equivalent; jnp.fft is used.
    x_ft = jnp.fft.rfftn(h, axes=(2, 3, 4))        # (Ci, B, sx, sy, sz//2+1) c64
    zdim = min(x_ft.shape[4], m3)

    corners = jnp.stack(
        [
            x_ft[:, :, :m1, :m2, :zdim],
            x_ft[:, :, sx - m1:, :m2, :zdim],
            x_ft[:, :, :m1, sy - m2:, :zdim],
            x_ft[:, :, sx - m1:, sy - m2:, :zdim],
        ],
        axis=0,
    )                                               # (4, Ci, B, m1, m2, zdim)
    if zdim < m3:                                   # only pad when truncated
        corners = jnp.pad(corners, ((0, 0),) * 5 + ((0, m3 - zdim),))
    # mode-sized transpose (tiny vs. the full grid): -> (4, B, Ci, M)
    corners = jnp.transpose(corners, (0, 2, 1, 3, 4, 5)).reshape(4, B, Ci, M)
    if Ci_pad != Ci or M_pad != M:
        corners = jnp.pad(corners, ((0, 0), (0, 0), (0, Ci_pad - Ci), (0, M_pad - M)))

    ar = jnp.real(corners).astype(jnp.float32)
    ai = jnp.imag(corners).astype(jnp.float32)

    out_r, out_i = compl_mul_corners(ar, ai, wr_stack, wi_stack)   # (4, B, Co, M_pad)

    out_c = jax.lax.complex(out_r[..., :M], out_i[..., :M])        # (4, B, Co, M)
    out_c = out_c.reshape(4, B, Co, m1, m2, m3)
    out_c = jnp.transpose(out_c, (0, 2, 1, 3, 4, 5))               # (4, Co, B, m1, m2, m3)
    c1, c2, c3, c4 = out_c[0], out_c[1], out_c[2], out_c[3]

    if 2 * m1 <= sx and 2 * m2 <= sy:
        # assemble out_ft by concatenation (no zeros + 4 scatter passes)
        def y_row(lo, hi):
            mid_y = sy - 2 * m2
            parts = [lo]
            if mid_y > 0:
                parts.append(jnp.zeros((Co, B, m1, mid_y, m3), jnp.complex64))
            parts.append(hi)
            return jnp.concatenate(parts, axis=3)

        top = y_row(c1, c3)        # x in [0, m1)
        bot = y_row(c2, c4)        # x in [sx-m1, sx)
        parts = [top]
        mid_x = sx - 2 * m1
        if mid_x > 0:
            parts.append(jnp.zeros((Co, B, mid_x, sy, m3), jnp.complex64))
        parts.append(bot)
        out_ft = jnp.concatenate(parts, axis=2)     # (Co, B, sx, sy, m3)
    else:
        # overlapping corners: keep the reference overwrite order
        out_ft = jnp.zeros((Co, B, sx, sy, m3), jnp.complex64)
        out_ft = out_ft.at[:, :, :m1, :m2].set(c1)
        out_ft = out_ft.at[:, :, sx - m1:, :m2].set(c2)
        out_ft = out_ft.at[:, :, :m1, sy - m2:].set(c3)
        out_ft = out_ft.at[:, :, sx - m1:, sy - m2:].set(c4)

    # irfftn zero-pads/crops the truncated last frequency axis, like torch.
    return jnp.fft.irfftn(out_ft, s=(sx, sy, sz), axes=(2, 3, 4))   # (Co,B,sx,sy,sz) f32


# ----------------------------------------------------------------------------
# FNO3d forward — hidden tensor kept channel-major (C, B, X, Y, Z)
# ----------------------------------------------------------------------------
def fno3d_forward(params, x, modes, pad_ratio):
    """x: (B, X, Y, T, in_dim) -> (B, X, Y, T, out_dim). `modes`/`pad_ratio` static."""
    modes1, modes2, modes3 = modes
    B, SX, SY, ST, Din = x.shape

    if max(pad_ratio) > 0:
        num_pad = [int(round(ST * r)) for r in pad_ratio]
    else:
        num_pad = [0, 0]

    # single small input transpose to the channel-major layout
    xt = jnp.transpose(x, (4, 0, 1, 2, 3)).reshape(Din, -1)        # (Din, B*SX*SY*ST)

    # fc0 — channel-major pointwise
    C0 = params["fc0_w"].shape[0]
    h = pointwise_linear(xt, params["fc0_w"], params["fc0_b"])     # (C0, N)
    h = h.reshape(C0, B, SX, SY, ST)

    if max(num_pad) > 0:
        h = jnp.pad(h, ((0, 0), (0, 0), (0, 0), (0, 0), (num_pad[0], num_pad[1])))

    sx, sy, sz = h.shape[2], h.shape[3], h.shape[4]
    L = len(params["ws"])
    for i in range(L):
        wr_stack, wi_stack = params["sp"][i]
        m1, m2, m3 = modes1[i], modes2[i], modes3[i]               # static Python ints

        # spectral branch
        x1 = spectral_conv3d(h, wr_stack, wi_stack, m1, m2, m3)    # (Co, B, sx, sy, sz)
        Ci = h.shape[0]
        Co = x1.shape[0]

        # 1x1 conv branch + residual add + activation, fused in one Pallas kernel
        ww, wb = params["ws"][i]
        act = (i != L - 1)
        y = pointwise_linear(h.reshape(Ci, -1), ww, wb,
                             residual=x1.reshape(Co, -1), act=act)
        h = y.reshape(Co, B, sx, sy, sz)

    if max(num_pad) > 0:
        h = h[..., num_pad[0]: sz - num_pad[1]]

    # fc1 -> GELU -> fc2 fused, channel-major
    Clast = h.shape[0]
    y = fused_mlp(h.reshape(Clast, -1),
                  params["fc1_w"], params["fc1_b"],
                  params["fc2_w"], params["fc2_b"])                # (out_dim, N)
    out_dim = y.shape[0]
    y = y.reshape(out_dim, B, SX, SY, ST)
    return jnp.transpose(y, (1, 2, 3, 4, 0))                       # (B, X, Y, T, out_dim)


# ----------------------------------------------------------------------------
# Deterministic parameter initialization (shapes match the PyTorch __init__;
# dense weights stored (Cout, Cin) for the channel-major kernels; spectral
# weights pre-split real/imag, stacked over corners, flattened over modes and
# padded to lane-dense / Ci-chunk-aligned shapes).  NOTE: no Python ints inside
# the param pytree (they would be traced under jit).
# ----------------------------------------------------------------------------
def init_params(key, modes1, modes2, modes3, layers, in_dim, out_dim, fc_dim):
    keys = jax.random.split(key, 128)
    it = iter(keys)

    def lin(fan_in, fan_out):
        k = 1.0 / float(fan_in) ** 0.5
        w = jax.random.uniform(next(it), (fan_out, fan_in), jnp.float32, -k, k)
        b = jax.random.uniform(next(it), (fan_out,), jnp.float32, -k, k)
        return w, b

    params = {}
    params["fc0_w"], params["fc0_b"] = lin(in_dim, layers[0])

    sp, ws = [], []
    for ci, co, m1, m2, m3 in zip(layers, layers[1:], modes1, modes2, modes3):
        scale = 1.0 / (ci * co)
        M = m1 * m2 * m3
        M_pad = _round_up(M, 128)
        Ci_pad = _round_up(ci, 8)
        wr_list, wi_list = [], []
        for _ in range(4):  # weights1..weights4: complex uniform [0, scale)
            wr = scale * jax.random.uniform(next(it), (ci, co, m1, m2, m3), jnp.float32)
            wi = scale * jax.random.uniform(next(it), (ci, co, m1, m2, m3), jnp.float32)
            wr_list.append(wr.reshape(ci, co, M))
            wi_list.append(wi.reshape(ci, co, M))
        wr_stack = jnp.stack(wr_list, axis=0)          # (4, Ci, Co, M)
        wi_stack = jnp.stack(wi_list, axis=0)
        pad = ((0, 0), (0, Ci_pad - ci), (0, 0), (0, M_pad - M))
        wr_stack = jnp.pad(wr_stack, pad)              # (4, Ci_pad, Co, M_pad)
        wi_stack = jnp.pad(wi_stack, pad)
        sp.append((wr_stack, wi_stack))
        ws.append(lin(ci, co))                         # 1x1 Conv1d == (Co, Ci) + bias
    params["sp"] = sp
    params["ws"] = ws

    params["fc1_w"], params["fc1_b"] = lin(layers[-1], fc_dim)
    params["fc2_w"], params["fc2_b"] = lin(fc_dim, out_dim)
    return params


# ----------------------------------------------------------------------------
# Demo
# ----------------------------------------------------------------------------
if __name__ == "__main__":
    # Small config: 3 FNO blocks, width 8, modes (4,4,4), fc_dim 32.
    modes1 = [4, 4, 4]
    modes2 = [4, 4, 4]
    modes3 = [4, 4, 4]
    layers = [8, 8, 8, 8]
    in_dim, out_dim, fc_dim = 4, 1, 32
    pad_ratio = [0.0, 0.0]

    key = jax.random.PRNGKey(0)
    kp, kx = jax.random.split(key)
    params = init_params(kp, modes1, modes2, modes3, layers, in_dim, out_dim, fc_dim)

    B, SX, SY, ST = 2, 8, 8, 8
    x = jax.random.normal(kx, (B, SX, SY, ST, in_dim), dtype=jnp.float32)

    fwd = jax.jit(
        lambda p, xx: fno3d_forward(p, xx, (modes1, modes2, modes3), pad_ratio)
    )
    out = fwd(params, x)
    out = jax.block_until_ready(out)
    assert out.shape == (B, SX, SY, ST, out_dim), out.shape
    assert out.dtype == jnp.float32
    print("KERNEL_OK")
</pallas_src>

<mosaic_0001>
module attributes {stable_mosaic.version = 11 : i64} {
  func.func @_linear_kernel(%arg0: i32, %arg1: memref<4x512xf32, #tpu.memory_space<vmem>>, %arg2: memref<8x4xf32, #tpu.memory_space<vmem>>, %arg3: memref<8x1xf32, #tpu.memory_space<vmem>>, %arg4: memref<8x512xf32, #tpu.memory_space<vmem>>) attributes {dimension_semantics = [#tpu.dimension_semantics<parallel>], iteration_bounds = array<i64: 2>, scalar_prefetch = 0 : i64, scratch_operands = 0 : i64, tpu.core_type = #tpu.core_type<tc>, window_params = [{transform_indices = @transform_0, window_bounds = array<i64: 4, 512>}, {pipeline_mode = #tpu.pipeline_mode<synchronous>, transform_indices = @transform_1, window_bounds = array<i64: 8, 4>}, {pipeline_mode = #tpu.pipeline_mode<synchronous>, transform_indices = @transform_2, window_bounds = array<i64: 8, 1>}, {transform_indices = @transform_3, window_bounds = array<i64: 8, 512>}]} {
    %c0 = arith.constant 0 : index
    %c0_0 = arith.constant 0 : index
    %0 = vector.load %arg2[%c0, %c0_0] : memref<8x4xf32, #tpu.memory_space<vmem>>, vector<8x4xf32>
    %1 = arith.truncf %0 : vector<8x4xf32> to vector<8x4xbf16>
    %c0_1 = arith.constant 0 : index
    %c0_2 = arith.constant 0 : index
    %2 = vector.load %arg1[%c0_1, %c0_2] : memref<4x512xf32, #tpu.memory_space<vmem>>, vector<4x512xf32>
    %3 = arith.truncf %2 : vector<4x512xf32> to vector<4x512xbf16>
    %cst = arith.constant dense<0.000000e+00> : vector<8x512xf32>
    %4 = tpu.matmul %1, %3, %cst {dimension_numbers = #tpu.dot_dimension_numbers<[1], [0], [0], [1], [0, 0, 1, 1], [], []>} : vector<8x4xbf16>, vector<4x512xbf16>, vector<8x512xf32> -> vector<8x512xf32>
    %c0_3 = arith.constant 0 : index
    %c0_4 = arith.constant 0 : index
    %5 = vector.load %arg3[%c0_3, %c0_4] : memref<8x1xf32, #tpu.memory_space<vmem>>, vector<8x1xf32>
    %6 = vector.broadcast %5 : vector<8x1xf32> to vector<8x512xf32>
    %7 = arith.addf %4, %6 : vector<8x512xf32>
    %c0_5 = arith.constant 0 : index
    %c0_6 = arith.constant 0 : index
    %8 = vector.load %arg4[%c0_5, %c0_6] : memref<8x512xf32, #tpu.memory_space<vmem>>, vector<8x512xf32>
    tpu.vector_store %arg4[%c0_5, %c0_6], %7 {strides = array<i32>} : memref<8x512xf32, #tpu.memory_space<vmem>>, vector<8x512xf32>,
    return
  }
  func.func @transform_0(%arg0: i32) -> (i32, i32) {
    %c0_i32 = arith.constant 0 : i32
    %c0_i32_0 = arith.constant 0 : i32
    return %c0_i32, %arg0 : i32, i32
  }
  func.func @transform_1(%arg0: i32) -> (i32, i32) {
    %c0_i32 = arith.constant 0 : i32
    %c0_i32_0 = arith.constant 0 : i32
    %c0_i32_1 = arith.constant 0 : i32
    return %c0_i32, %c0_i32_0 : i32, i32
  }
  func.func @transform_2(%arg0: i32) -> (i32, i32) {
    %c0_i32 = arith.constant 0 : i32
    %c0_i32_0 = arith.constant 0 : i32
    %c0_i32_1 = arith.constant 0 : i32
    return %c0_i32, %c0_i32_0 : i32, i32
  }
  func.func @transform_3(%arg0: i32) -> (i32, i32) {
    %c0_i32 = arith.constant 0 : i32
    %c0_i32_0 = arith.constant 0 : i32
    return %c0_i32, %arg0 : i32, i32
  }
}

module attributes {stable_mosaic.version = 11 : i64} {
  func.func @_cmul_kernel(%arg0: i32, %arg1: i32, %arg2: i32, %arg3: memref<1x2x8x128xf32, #tpu.memory_space<vmem>>, %arg4: memref<1x2x8x128xf32, #tpu.memory_space<vmem>>, %arg5: memref<1x8x8x128xf32, #tpu.memory_space<vmem>>, %arg6: memref<1x8x8x128xf32, #tpu.memory_space<vmem>>, %arg7: memref<1x2x8x128xf32, #tpu.memory_space<vmem>>, %arg8: memref<1x2x8x128xf32, #tpu.memory_space<vmem>>) attributes {dimension_semantics = [#tpu.dimension_semantics<parallel>, #tpu.dimension_semantics<parallel>, #tpu.dimension_semantics<arbitrary>], iteration_bounds = array<i64: 4, 1, 1>, scalar_prefetch = 0 : i64, scratch_operands = 0 : i64, tpu.core_type = #tpu.core_type<tc>, window_params = [{transform_indices = @transform_0, window_bounds = array<i64: 1, 2, 8, 128>}, {transform_indices = @transform_1, window_bounds = array<i64: 1, 2, 8, 128>}, {transform_indices = @transform_2, window_bounds = array<i64: 1, 8, 8, 128>}, {transform_indices = @transform_3, window_bounds = array<i64: 1, 8, 8, 128>}, {transform_indices = @transform_4, window_bounds = array<i64: 1, 2, 8, 128>}, {transform_indices = @transform_5, window_bounds = array<i64: 1, 2, 8, 128>}]} {
    %c0_i32 = arith.constant 0 : i32
    %0 = arith.cmpi eq, %arg2, %c0_i32 : i32
    %1 = arith.extui %0 : i1 to i32
    %c0_i32_0 = arith.constant 0 : i32
    %2 = arith.cmpi ne, %1, %c0_i32_0 : i32
    scf.if %2 {
      %cst = arith.constant 0.000000e+00 : f32
      %407 = vector.broadcast %cst : f32 to vector<1x2x8x128xf32>
      %c0_233 = arith.constant 0 : index
      %c0_234 = arith.constant 0 : index
      %c0_235 = arith.constant 0 : index
      %c0_236 = arith.constant 0 : index
      %408 = vector.load %arg7[%c0_233, %c0_234, %c0_235, %c0_236] : memref<1x2x8x128xf32, #tpu.memory_space<vmem>>, vector<1x2x8x128xf32>
      tpu.vector_store %arg7[%c0_233, %c0_234, %c0_235, %c0_236], %407 {strides = array<i32>} : memref<1x2x8x128xf32, #tpu.memory_space<vmem>>, vector<1x2x8x128xf32>,
      %cst_237 = arith.constant 0.000000e+00 : f32
      %409 = vector.broadcast %cst_237 : f32 to vector<1x2x8x128xf32>
      %c0_238 = arith.constant 0 : index
      %c0_239 = arith.constant 0 : index
      %c0_240 = arith.constant 0 : index
      %c0_241 = arith.constant 0 : index
      %410 = vector.load %arg8[%c0_238, %c0_239, %c0_240, %c0_241] : memref<1x2x8x128xf32, #tpu.memory_space<vmem>>, vector<1x2x8x128xf32>
      tpu.vector_store %arg8[%c0_238, %c0_239, %c0_240, %c0_241], %409 {strides = array<i32>} : memref<1x2x8x128xf32, #tpu.memory_space<vmem>>, vector<1x2x8x128xf32>,
    } else {
    }
    %c0 = arith.constant 0 : index
    %c0_1 = arith.constant 0 : index
    %c0_2 = arith.constant 0 : index
    %c0_3 = arith.constant 0 : index
    %3 = vector.load %arg7[%c0, %c0_1, %c0_2, %c0_3] : memref<1x2x8x128xf32, #tpu.memory_space<vmem>>, vector<1x1x8x128xf32>
    %4 = vector.shape_cast %3 : vector<1x1x8x128xf32> to vector<8x128xf32>
    %c0_4 = arith.constant 0 : index
    %c0_5 = arith.constant 0 : index
    %c0_6 = arith.constant 0 : index
    %c0_7 = arith.constant 0 : index
    %5 = vector.load %arg8[%c0_4, %c0_5, %c0_6, %c0_7] : memref<1x2x8x128xf32, #tpu.memory_space<vmem>>, vector<1x1x8x128xf32>
    %6 = vector.shape_cast %5 : vector<1x1x8x128xf32> to vector<8x128xf32>
    %c0_i32_8 = arith.constant 0 : i32
    %c0_9 = arith.constant 0 : index
    %c0_10 = arith.constant 0 : index
    %7 = arith.index_cast %c0_i32_8 : i32 to index
    %c0_11 = arith.constant 0 : index
    %8 = vector.load %arg3[%c0_9, %c0_10, %7, %c0_11] : memref<1x2x8x128xf32, #tpu.memory_space<vmem>>, vector<1x1x1x128xf32>
    %9 = vector.shape_cast %8 : vector<1x1x1x128xf32> to vector<1x128xf32>
    %c0_12 = arith.constant 0 : index
    %c0_13 = arith.constant 0 : index
    %10 = arith.index_cast %c0_i32_8 : i32 to index
    %c0_14 = arith.constant 0 : index
    %11 = vector.load %arg4[%c0_12, %c0_13, %10, %c0_14] : memref<1x2x8x128xf32, #tpu.memory_space<vmem>>, vector<1x1x1x128xf32>
    %12 = vector.shape_cast %11 : vector<1x1x1x128xf32> to vector<1x128xf32>
    %c0_15 = arith.constant 0 : index
    %13 = arith.index_cast %c0_i32_8 : i32 to index
    %c0_16 = arith.constant 0 : index
    %c0_17 = arith.constant 0 : index
    %14 = vector.load %arg5[%c0_15, %13, %c0_16, %c0_17] : memref<1x8x8x128xf32, #tpu.memory_space<vmem>>, vector<1x1x8x128xf32>
    %15 = vector.shape_cast %14 : vector<1x1x8x128xf32> to vector<8x128xf32>
    %c0_18 = arith.constant 0 : index
    %16 = arith.index_cast %c0_i32_8 : i32 to index
    %c0_19 = arith.constant 0 : index
    %c0_20 = arith.constant 0 : index
    %17 = vector.load %arg6[%c0_18, %16, %c0_19, %c0_20] : memref<1x8x8x128xf32, #tpu.memory_space<vmem>>, vector<1x1x8x128xf32>
    %18 = vector.shape_cast %17 : vector<1x1x8x128xf32> to vector<8x128xf32>
    %19 = vector.broadcast %9 : vector<1x128xf32> to vector<8x128xf32>
    %20 = arith.mulf %19, %15 : vector<8x128xf32>
    %21 = arith.addf %4, %20 : vector<8x128xf32>
    %22 = vector.broadcast %12 : vector<1x128xf32> to vector<8x128xf32>
    %23 = arith.mulf %22, %18 : vector<8x128xf32>
    %24 = arith.subf %21, %23 : vector<8x128xf32>
    %25 = vector.broadcast %9 : vector<1x128xf32> to vector<8x128xf32>
    %26 = arith.mulf %25, %18 : vector<8x128xf32>
    %27 = arith.addf %6, %26 : vector<8x128xf32>
    %28 = vector.broadcast %12 : vector<1x128xf32> to vector<8x128xf32>
    %29 = arith.mulf %28, %15 : vector<8x128xf32>
    %30 = arith.addf %27, %29 : vector<8x128xf32>
    %c1_i32 = arith.constant 1 : i32
    %c0_21 = arith.constant 0 : index
    %c0_22 = arith.constant 0 : index
    %31 = arith.index_cast %c1_i32 : i32 to index
    %c0_23 = arith.constant 0 : index
    %32 = vector.load %arg3[%c0_21, %c0_22, %31, %c0_23] : memref<1x2x8x128xf32, #tpu.memory_space<vmem>>, vector<1x1x1x128xf32>
    %33 = vector.shape_cast %32 : vector<1x1x1x128xf32> to vector<1x128xf32>
    %c0_24 = arith.constant 0 : index
    %c0_25 = arith.constant 0 : index
    %34 = arith.index_cast %c1_i32 : i32 to index
    %c0_26 = arith.constant 0 : index
    %35 = vector.load %arg4[%c0_24, %c0_25, %34, %c0_26] : memref<1x2x8x128xf32, #tpu.memory_space<vmem>>, vector<1x1x1x128xf32>
    %36 = vector.shape_cast %35 : vector<1x1x1x128xf32> to vector<1x128xf32>
    %c0_27 = arith.constant 0 : index
    %37 = arith.index_cast %c1_i32 : i32 to index
    %c0_28 = arith.constant 0 : index
    %c0_29 = arith.constant 0 : index
    %38 = vector.load %arg5[%c0_27, %37, %c0_28, %c0_29] : memref<1x8x8x128xf32, #tpu.memory_space<vmem>>, vector<1x1x8x128xf32>
    %39 = vector.shape_cast %38 : vector<1x1x8x128xf32> to vector<8x128xf32>
    %c0_30 = arith.constant 0 : index
    %40 = arith.index_cast %c1_i32 : i32 to index
    %c0_31 = arith.constant 0 : index
    %c0_32 = arith.constant 0 : index
    %41 = vector.load %arg6[%c0_30, %40, %c0_31, %c0_32] : memref<1x8x8x128xf32, #tpu.memory_space<vmem>>, vector<1x1x8x128xf32>
    %42 = vector.shape_cast %41 : vector<1x1x8x128xf32> to vector<8x128xf32>
    %43 = vector.broadcast %33 : vector<1x128xf32> to vector<8x128xf32>
    %44 = arith.mulf %43, %39 : vector<8x128xf32>
    %45 = arith.addf %24, %44 : vector<8x128xf32>
    %46 = vector.broadcast %36 : vector<1x128xf32> to vector<8x128xf32>
    %47 = arith.mulf %46, %42 : vector<8x128xf32>
    %48 = arith.subf %45, %47 : vector<8x128xf32>
    %49 = vector.broadcast %33 : vector<1x128xf32> to vector<8x128xf32>
    %50 = arith.mulf %49, %42 : vector<8x128xf32>
    %51 = arith.addf %30, %50 : vector<8x128xf32>
    %52 = vector.broadcast %36 : vector<1x128xf32> to vector<8x128xf32>
    %53 = arith.mulf %52, %39 : vector<8x128xf32>
    %54 = arith.addf %51, %53 : vector<8x128xf32>
    %c2_i32 = arith.constant 2 : i32
    %c0_33 = arith.constant 0 : index
    %c0_34 = arith.constant 0 : index
    %55 = arith.index_cast %c2_i32 : i32 to index
    %c0_35 = arith.constant 0 : index
    %56 = vector.load %arg3[%c0_33, %c0_34, %55, %c0_35] : memref<1x2x8x128xf32, #tpu.memory_space<vmem>>, vector<1x1x1x128xf32>
    %57 = vector.shape_cast %56 : vector<1x1x1x128xf32> to vector<1x128xf32>
    %c0_36 = arith.constant 0 : index
    %c0_37 = arith.constant 0 : index
    %58 = arith.index_cast %c2_i32 : i32 to index
    %c0_38 = arith.constant 0 : index
    %59 = vector.load %arg4[%c0_36, %c0_37, %58, %c0_38] : memref<1x2x8x128xf32, #tpu.memory_space<vmem>>, vector<1x1x1x128xf32>
    %60 = vector.shape_cast %59 : vector<1x1x1x128xf32> to vector<1x128xf32>
    %c0_39 = arith.constant 0 : index
    %61 = arith.index_cast %c2_i32 : i32 to index
    %c0_40 = arith.constant 0 : index
    %c0_41 = arith.constant 0 : index
    %62 = vector.load %arg5[%c0_39, %61, %c0_40, %c0_41] : memref<1x8x8x128xf32, #tpu.memory_space<vmem>>, vector<1x1x8x128xf32>
    %63 = vector.shape_cast %62 : vector<1x1x8x128xf32> to vector<8x128xf32>
    %c0_42 = arith.constant 0 : index
    %64 = arith.index_cast %c2_i32 : i32 to index
    %c0_43 = arith.constant 0 : index
    %c0_44 = arith.constant 0 : index
    %65 = vector.load %arg6[%c0_42, %64, %c0_43, %c0_44] : memref<1x8x8x128xf32, #tpu.memory_space<vmem>>, vector<1x1x8x128xf32>
    %66 = vector.shape_cast %65 : vector<1x1x8x128xf32> to vector<8x128xf32>
    %67 = vector.broadcast %57 : vector<1x128xf32> to vector<8x128xf32>
    %68 = arith.mulf %67, %63 : vector<8x128xf32>
    %69 = arith.addf %48, %68 : vector<8x128xf32>
    %70 = vector.broadcast %60 : vector<1x128xf32> to vector<8x128xf32>
    %71 = arith.mulf %70, %66 : vector<8x128xf32>
    %72 = arith.subf %69, %71 : vector<8x128xf32>
    %73 = vector.broadcast %57 : vector<1x128xf32> to vector<8x128xf32>
    %74 = arith.mulf %73, %66 : vector<8x128xf32>
    %75 = arith.addf %54, %74 : vector<8x128xf32>
    %76 = vector.broadcast %60 : vector<1x128xf32> to vector<8x128xf32>
    %77 = arith.mulf %76, %63 : vector<8x128xf32>
    %78 = arith.addf %75, %77 : vector<8x128xf32>
    %c3_i32 = arith.constant 3 : i32
    %c0_45 = arith.constant 0 : index
    %c0_46 = arith.constant 0 : index
    %79 = arith.index_cast %c3_i32 : i32 to index
    %c0_47 = arith.constant 0 : index
    %80 = vector.load %arg3[%c0_45, %c0_46, %79, %c0_47] : memref<1x2x8x128xf32, #tpu.memory_space<vmem>>, vector<1x1x1x128xf32>
    %81 = vector.shape_cast %80 : vector<1x1x1x128xf32> to vector<1x128xf32>
    %c0_48 = arith.constant 0 : index
    %c0_49 = arith.constant 0 : index
    %82 = arith.index_cast %c3_i32 : i32 to index
    %c0_50 = arith.constant 0 : index
    %83 = vector.load %arg4[%c0_48, %c0_49, %82, %c0_50] : memref<1x2x8x128xf32, #tpu.memory_space<vmem>>, vector<1x1x1x128xf32>
    %84 = vector.shape_cast %83 : vector<1x1x1x128xf32> to vector<1x128xf32>
    %c0_51 = arith.constant 0 : index
    %85 = arith.index_cast %c3_i32 : i32 to index
    %c0_52 = arith.constant 0 : index
    %c0_53 = arith.constant 0 : index
    %86 = vector.load %arg5[%c0_51, %85, %c0_52, %c0_53] : memref<1x8x8x128xf32, #tpu.memory_space<vmem>>, vector<1x1x8x128xf32>
    %87 = vector.shape_cast %86 : vector<1x1x8x128xf32> to vector<8x128xf32>
    %c0_54 = arith.constant 0 : index
    %88 = arith.index_cast %c3_i32 : i32 to index
    %c0_55 = arith.constant 0 : index
    %c0_56 = arith.constant 0 : index
    %89 = vector.load %arg6[%c0_54, %88, %c0_55, %c0_56] : memref<1x8x8x128xf32, #tpu.memory_space<vmem>>, vector<1x1x8x128xf32>
    %90 = vector.shape_cast %89 : vector<1x1x8x128xf32> to vector<8x128xf32>
    %91 = vector.broadcast %81 : vector<1x128xf32> to vector<8x128xf32>
    %92 = arith.mulf %91, %87 : vector<8x128xf32>
    %93 = arith.addf %72, %92 : vector<8x128xf32>
    %94 = vector.broadcast %84 : vector<1x128xf32> to vector<8x128xf32>
    %95 = arith.mulf %94, %90 : vector<8x128xf32>
    %96 = arith.subf %93, %95 : vector<8x128xf32>
    %97 = vector.broadcast %81 : vector<1x128xf32> to vector<8x128xf32>
    %98 = arith.mulf %97, %90 : vector<8x128xf32>
    %99 = arith.addf %78, %98 : vector<8x128xf32>
    %100 = vector.broadcast %84 : vector<1x128xf32> to vector<8x128xf32>
    %101 = arith.mulf %100, %87 : vector<8x128xf32>
    %102 = arith.addf %99, %101 : vector<8x128xf32>
    %c4_i32 = arith.constant 4 : i32
    %c0_57 = arith.constant 0 : index
    %c0_58 = arith.constant 0 : index
    %103 = arith.index_cast %c4_i32 : i32 to index
    %c0_59 = arith.constant 0 : index
    %104 = vector.load %arg3[%c0_57, %c0_58, %103, %c0_59] : memref<1x2x8x128xf32, #tpu.memory_space<vmem>>, vector<1x1x1x128xf32>
    %105 = vector.shape_cast %104 : vector<1x1x1x128xf32> to vector<1x128xf32>
    %c0_60 = arith.constant 0 : index
    %c0_61 = arith.constant 0 : index
    %106 = arith.index_cast %c4_i32 : i32 to index
    %c0_62 = arith.constant 0 : index
    %107 = vector.load %arg4[%c0_60, %c0_61, %106, %c0_62] : memref<1x2x8x128xf32, #tpu.memory_space<vmem>>, vector<1x1x1x128xf32>
    %108 = vector.shape_cast %107 : vector<1x1x1x128xf32> to vector<1x128xf32>
    %c0_63 = arith.constant 0 : index
    %109 = arith.index_cast %c4_i32 : i32 to index
    %c0_64 = arith.constant 0 : index
    %c0_65 = arith.constant 0 : index
    %110 = vector.load %arg5[%c0_63, %109, %c0_64, %c0_65] : memref<1x8x8x128xf32, #tpu.memory_space<vmem>>, vector<1x1x8x128xf32>
    %111 = vector.shape_cast %110 : vector<1x1x8x128xf32> to vector<8x128xf32>
    %c0_66 = arith.constant 0 : index
    %112 = arith.index_cast %c4_i32 : i32 to index
    %c0_67 = arith.constant 0 : index
    %c0_68 = arith.constant 0 : index
    %113 = vector.load %arg6[%c0_66, %112, %c0_67, %c0_68] : memref<1x8x8x128xf32, #tpu.memory_space<vmem>>, vector<1x1x8x128xf32>
    %114 = vector.shape_cast %113 : vector<1x1x8x128xf32> to vector<8x128xf32>
    %115 = vector.broadcast %105 : vector<1x128xf32> to vector<8x128xf32>
    %116 = arith.mulf %115, %111 : vector<8x128xf32>
    %117 = arith.addf %96, %116 : vector<8x128xf32>
    %118 = vector.broadcast %108 : vector<1x128xf32> to vector<8x128xf32>
    %119 = arith.mulf %118, %114 : vector<8x128xf32>
    %120 = arith.subf %117, %119 : vector<8x128xf32>
    %121 = vector.broadcast %105 : vector<1x128xf32> to vector<8x128xf32>
    %122 = arith.mulf %121, %114 : vector<8x128xf32>
    %123 = arith.addf %102, %122 : vector<8x128xf32>
    %124 = vector.broadcast %108 : vector<1x128xf32> to vector<8x128xf32>
    %125 = arith.mulf %124, %111 : vector<8x128xf32>
    %126 = arith.addf %123, %125 : vector<8x128xf32>
    %c5_i32 = arith.constant 5 : i32
    %c0_69 = arith.constant 0 : index
    %c0_70 = arith.constant 0 : index
    %127 = arith.index_cast %c5_i32 : i32 to index
    %c0_71 = arith.constant 0 : index
    %128 = vector.load %arg3[%c0_69, %c0_70, %127, %c0_71] : memref<1x2x8x128xf32, #tpu.memory_space<vmem>>, vector<1x1x1x128xf32>
    %129 = vector.shape_cast %128 : vector<1x1x1x128xf32> to vector<1x128xf32>
    %c0_72 = arith.constant 0 : index
    %c0_73 = arith.constant 0 : index
    %130 = arith.index_cast %c5_i32 : i32 to index
    %c0_74 = arith.constant 0 : index
    %131 = vector.load %arg4[%c0_72, %c0_73, %130, %c0_74] : memref<1x2x8x128xf32, #tpu.memory_space<vmem>>, vector<1x1x1x128xf32>
    %132 = vector.shape_cast %131 : vector<1x1x1x128xf32> to vector<1x128xf32>
    %c0_75 = arith.constant 0 : index
    %133 = arith.index_cast %c5_i32 : i32 to index
    %c0_76 = arith.constant 0 : index
    %c0_77 = arith.constant 0 : index
    %134 = vector.load %arg5[%c0_75, %133, %c0_76, %c0_77] : memref<1x8x8x128xf32, #tpu.memory_space<vmem>>, vector<1x1x8x128xf32>
    %135 = vector.shape_cast %134 : vector<1x1x8x128xf32> to vector<8x128xf32>
    %c0_78 = arith.constant 0 : index
    %136 = arith.index_cast %c5_i32 : i32 to index
    %c0_79 = arith.constant 0 : index
    %c0_80 = arith.constant 0 : index
    %137 = vector.load %arg6[%c0_78, %136, %c0_79, %c0_80] : memref<1x8x8x128xf32, #tpu.memory_space<vmem>>, vector<1x1x8x128xf32>
    %138 = vector.shape_cast %137 : vector<1x1x8x128xf32> to vector<8x128xf32>
    %139 = vector.broadcast %129 : vector<1x128xf32> to vector<8x128xf32>
    %140 = arith.mulf %139, %135 : vector<8x128xf32>
    %141 = arith.addf %120, %140 : vector<8x128xf32>
    %142 = vector.broadcast %132 : vector<1x128xf32> to vector<8x128xf32>
    %143 = arith.mulf %142, %138 : vector<8x128xf32>
    %144 = arith.subf %141, %143 : vector<8x128xf32>
    %145 = vector.broadcast %129 : vector<1x128xf32> to vector<8x128xf32>
    %146 = arith.mulf %145, %138 : vector<8x128xf32>
    %147 = arith.addf %126, %146 : vector<8x128xf32>
    %148 = vector.broadcast %132 : vector<1x128xf32> to vector<8x128xf32>
    %149 = arith.mulf %148, %135 : vector<8x128xf32>
    %150 = arith.addf %147, %149 : vector<8x128xf32>
    %c6_i32 = arith.constant 6 : i32
    %c0_81 = arith.constant 0 : index
    %c0_82 = arith.constant 0 : index
    %151 = arith.index_cast %c6_i32 : i32 to index
    %c0_83 = arith.constant 0 : index
    %152 = vector.load %arg3[%c0_81, %c0_82, %151, %c0_83] : memref<1x2x8x128xf32, #tpu.memory_space<vmem>>, vector<1x1x1x128xf32>
    %153 = vector.shape_cast %152 : vector<1x1x1x128xf32> to vector<1x128xf32>
    %c0_84 = arith.constant 0 : index
    %c0_85 = arith.constant 0 : index
    %154 = arith.index_cast %c6_i32 : i32 to index
    %c0_86 = arith.constant 0 : index
    %155 = vector.load %arg4[%c0_84, %c0_85, %154, %c0_86] : memref<1x2x8x128xf32, #tpu.memory_space<vmem>>, vector<1x1x1x128xf32>
    %156 = vector.shape_cast %155 : vector<1x1x1x128xf32> to vector<1x128xf32>
    %c0_87 = arith.constant 0 : index
    %157 = arith.index_cast %c6_i32 : i32 to index
    %c0_88 = arith.constant 0 : index
    %c0_89 = arith.constant 0 : index
    %158 = vector.load %arg5[%c0_87, %157, %c0_88, %c0_89] : memref<1x8x8x128xf32, #tpu.memory_space<vmem>>, vector<1x1x8x128xf32>
    %159 = vector.shape_cast %158 : vector<1x1x8x128xf32> to vector<8x128xf32>
    %c0_90 = arith.constant 0 : index
    %160 = arith.index_cast %c6_i32 : i32 to index
    %c0_91 = arith.constant 0 : index
    %c0_92 = arith.constant 0 : index
    %161 = vector.load %arg6[%c0_90, %160, %c0_91, %c0_92] : memref<1x8x8x128xf32, #tpu.memory_space<vmem>>, vector<1x1x8x128xf32>
    %162 = vector.shape_cast %161 : vector<1x1x8x128xf32> to vector<8x128xf32>
    %163 = vector.broadcast %153 : vector<1x128xf32> to vector<8x128xf32>
    %164 = arith.mulf %163, %159 : vector<8x128xf32>
    %165 = arith.addf %144, %164 : vector<8x128xf32>
    %166 = vector.broadcast %156 : vector<1x128xf32> to vector<8x128xf32>
    %167 = arith.mulf %166, %162 : vector<8x128xf32>
    %168 = arith.subf %165, %167 : vector<8x128xf32>
    %169 = vector.broadcast %153 : vector<1x128xf32> to vector<8x128xf32>
    %170 = arith.mulf %169, %162 : vector<8x128xf32>
    %171 = arith.addf %150, %170 : vector<8x128xf32>
    %172 = vector.broadcast %156 : vector<1x128xf32> to vector<8x128xf32>
    %173 = arith.mulf %172, %159 : vector<8x128xf32>
    %174 = arith.addf %171, %173 : vector<8x128xf32>
    %c7_i32 = arith.constant 7 : i32
    %c0_93 = arith.constant 0 : index
    %c0_94 = arith.constant 0 : index
    %175 = arith.index_cast %c7_i32 : i32 to index
    %c0_95 = arith.constant 0 : index
    %176 = vector.load %arg3[%c0_93, %c0_94, %175, %c0_95] : memref<1x2x8x128xf32, #tpu.memory_space<vmem>>, vector<1x1x1x128xf32>
    %177 = vector.shape_cast %176 : vector<1x1x1x128xf32> to vector<1x128xf32>
    %c0_96 = arith.constant 0 : index
    %c0_97 = arith.constant 0 : index
    %178 = arith.index_cast %c7_i32 : i32 to index
    %c0_98 = arith.constant 0 : index
    %179 = vector.load %arg4[%c0_96, %c0_97, %178, %c0_98] : memref<1x2x8x128xf32, #tpu.memory_space<vmem>>, vector<1x1x1x128xf32>
    %180 = vector.shape_cast %179 : vector<1x1x1x128xf32> to vector<1x128xf32>
    %c0_99 = arith.constant 0 : index
    %181 = arith.index_cast %c7_i32 : i32 to index
    %c0_100 = arith.constant 0 : index
    %c0_101 = arith.constant 0 : index
    %182 = vector.load %arg5[%c0_99, %181, %c0_100, %c0_101] : memref<1x8x8x128xf32, #tpu.memory_space<vmem>>, vector<1x1x8x128xf32>
    %183 = vector.shape_cast %182 : vector<1x1x8x128xf32> to vector<8x128xf32>
    %c0_102 = arith.constant 0 : index
    %184 = arith.index_cast %c7_i32 : i32 to index
    %c0_103 = arith.constant 0 : index
    %c0_104 = arith.constant 0 : index
    %185 = vector.load %arg6[%c0_102, %184, %c0_103, %c0_104] : memref<1x8x8x128xf32, #tpu.memory_space<vmem>>, vector<1x1x8x128xf32>
    %186 = vector.shape_cast %185 : vector<1x1x8x128xf32> to vector<8x128xf32>
    %187 = vector.broadcast %177 : vector<1x128xf32> to vector<8x128xf32>
    %188 = arith.mulf %187, %183 : vector<8x128xf32>
    %189 = arith.addf %168, %188 : vector<8x128xf32>
    %190 = vector.broadcast %180 : vector<1x128xf32> to vector<8x128xf32>
    %191 = arith.mulf %190, %186 : vector<8x128xf32>
    %192 = arith.subf %189, %191 : vector<8x128xf32>
    %193 = vector.broadcast %177 : vector<1x128xf32> to vector<8x128xf32>
    %194 = arith.mulf %193, %186 : vector<8x128xf32>
    %195 = arith.addf %174, %194 : vector<8x128xf32>
    %196 = vector.broadcast %180 : vector<1x128xf32> to vector<8x128xf32>
    %197 = arith.mulf %196, %183 : vector<8x128xf32>
    %198 = arith.addf %195, %197 : vector<8x128xf32>
    %c8_i32 = arith.constant 8 : i32
    %c0_105 = arith.constant 0 : index
    %c0_106 = arith.constant 0 : index
    %c0_107 = arith.constant 0 : index
    %c0_108 = arith.constant 0 : index
    %199 = vector.load %arg7[%c0_105, %c0_106, %c0_107, %c0_108] : memref<1x2x8x128xf32, #tpu.memory_space<vmem>>, vector<1x1x8x128xf32>
    %200 = vector.shape_cast %199 : vector<1x1x8x128xf32> to vector<8x128xf32>
    %201 = vector.shape_cast %192 : vector<8x128xf32> to vector<1x1x8x128xf32>
    tpu.vector_store %arg7[%c0_105, %c0_106, %c0_107, %c0_108], %201 {strides = array<i32>} : memref<1x2x8x128xf32, #tpu.memory_space<vmem>>, vector<1x1x8x128xf32>,
    %c0_109 = arith.constant 0 : index
    %c0_110 = arith.constant 0 : index
    %c0_111 = arith.constant 0 : index
    %c0_112 = arith.constant 0 : index
    %202 = vector.load %arg8[%c0_109, %c0_110, %c0_111, %c0_112] : memref<1x2x8x128xf32, #tpu.memory_space<vmem>>, vector<1x1x8x128xf32>
    %203 = vector.shape_cast %202 : vector<1x1x8x128xf32> to vector<8x128xf32>
    %204 = vector.shape_cast %198 : vector<8x128xf32> to vector<1x1x8x128xf32>
    tpu.vector_store %arg8[%c0_109, %c0_110, %c0_111, %c0_112], %204 {strides = array<i32>} : memref<1x2x8x128xf32, #tpu.memory_space<vmem>>, vector<1x1x8x128xf32>,
    %c0_113 = arith.constant 0 : index
    %c1 = arith.constant 1 : index
    %c0_114 = arith.constant 0 : index
    %c0_115 = arith.constant 0 : index
    %205 = vector.load %arg7[%c0_113, %c1, %c0_114, %c0_115] : memref<1x2x8x128xf32, #tpu.memory_space<vmem>>, vector<1x1x8x128xf32>
    %206 = vector.shape_cast %205 : vector<1x1x8x128xf32> to vector<8x128xf32>
    %c0_116 = arith.constant 0 : index
    %c1_117 = arith.constant 1 : index
    %c0_118 = arith.constant 0 : index
    %c0_119 = arith.constant 0 : index
    %207 = vector.load %arg8[%c0_116, %c1_117, %c0_118, %c0_119] : memref<1x2x8x128xf32, #tpu.memory_space<vmem>>, vector<1x1x8x128xf32>
    %208 = vector.shape_cast %207 : vector<1x1x8x128xf32> to vector<8x128xf32>
    %c0_i32_120 = arith.constant 0 : i32
    %c0_121 = arith.constant 0 : index
    %c1_122 = arith.constant 1 : index
    %209 = arith.index_cast %c0_i32_120 : i32 to index
    %c0_123 = arith.constant 0 : index
    %210 = vector.load %arg3[%c0_121, %c1_122, %209, %c0_123] : memref<1x2x8x128xf32, #tpu.memory_space<vmem>>, vector<1x1x1x128xf32>
    %211 = vector.shape_cast %210 : vector<1x1x1x128xf32> to vector<1x128xf32>
    %c0_124 = arith.constant 0 : index
    %c1_125 = arith.constant 1 : index
    %212 = arith.index_cast %c0_i32_120 : i32 to index
    %c0_126 = arith.constant 0 : index
    %213 = vector.load %arg4[%c0_124, %c1_125, %212, %c0_126] : memref<1x2x8x128xf32, #tpu.memory_space<vmem>>, vector<1x1x1x128xf32>
    %214 = vector.shape_cast %213 : vector<1x1x1x128xf32> to vector<1x128xf32>
    %c0_127 = arith.constant 0 : index
    %215 = arith.index_cast %c0_i32_120 : i32 to index
    %c0_128 = arith.constant 0 : index
    %c0_129 = arith.constant 0 : index
    %216 = vector.load %arg5[%c0_127, %215, %c0_128, %c0_129] : memref<1x8x8x128xf32, #tpu.memory_space<vmem>>, vector<1x1x8x128xf32>
    %217 = vector.shape_cast %216 : vector<1x1x8x128xf32> to vector<8x128xf32>
    %c0_130 = arith.constant 0 : index
    %218 = arith.index_cast %c0_i32_120 : i32 to index
    %c0_131 = arith.constant 0 : index
    %c0_132 = arith.constant 0 : index
    %219 = vector.load %arg6[%c0_130, %218, %c0_131, %c0_132] : memref<1x8x8x128xf32, #tpu.memory_space<vmem>>, vector<1x1x8x128xf32>
    %220 = vector.shape_cast %219 : vector<1x1x8x128xf32> to vector<8x128xf32>
    %221 = vector.broadcast %211 : vector<1x128xf32> to vector<8x128xf32>
    %222 = arith.mulf %221, %217 : vector<8x128xf32>
    %223 = arith.addf %206, %222 : vector<8x128xf32>
    %224 = vector.broadcast %214 : vector<1x128xf32> to vector<8x128xf32>
    %225 = arith.mulf %224, %220 : vector<8x128xf32>
    %226 = arith.subf %223, %225 : vector<8x128xf32>
    %227 = vector.broadcast %211 : vector<1x128xf32> to vector<8x128xf32>
    %228 = arith.mulf %227, %220 : vector<8x128xf32>
    %229 = arith.addf %208, %228 : vector<8x128xf32>
    %230 = vector.broadcast %214 : vector<1x128xf32> to vector<8x128xf32>
    %231 = arith.mulf %230, %217 : vector<8x128xf32>
    %232 = arith.addf %229, %231 : vector<8x128xf32>
    %c1_i32_133 = arith.constant 1 : i32
    %c0_134 = arith.constant 0 : index
    %c1_135 = arith.constant 1 : index
    %233 = arith.index_cast %c1_i32_133 : i32 to index
    %c0_136 = arith.constant 0 : index
    %234 = vector.load %arg3[%c0_134, %c1_135, %233, %c0_136] : memref<1x2x8x128xf32, #tpu.memory_space<vmem>>, vector<1x1x1x128xf32>
    %235 = vector.shape_cast %234 : vector<1x1x1x128xf32> to vector<1x128xf32>
    %c0_137 = arith.constant 0 : index
    %c1_138 = arith.constant 1 : index
    %236 = arith.index_cast %c1_i32_133 : i32 to index
    %c0_139 = arith.constant 0 : index
    %237 = vector.load %arg4[%c0_137, %c1_138, %236, %c0_139] : memref<1x2x8x128xf32, #tpu.memory_space<vmem>>, vector<1x1x1x128xf32>
    %238 = vector.shape_cast %237 : vector<1x1x1x128xf32> to vector<1x128xf32>
    %c0_140 = arith.constant 0 : index
    %239 = arith.index_cast %c1_i32_133 : i32 to index
    %c0_141 = arith.constant 0 : index
    %c0_142 = arith.constant 0 : index
    %240 = vector.load %arg5[%c0_140, %239, %c0_141, %c0_142] : memref<1x8x8x128xf32, #tpu.memory_space<vmem>>, vector<1x1x8x128xf32>
    %241 = vector.shape_cast %240 : vector<1x1x8x128xf32> to vector<8x128xf32>
    %c0_143 = arith.constant 0 : index
    %242 = arith.index_cast %c1_i32_133 : i32 to index
    %c0_144 = arith.constant 0 : index
    %c0_145 = arith.constant 0 : index
    %243 = vector.load %arg6[%c0_143, %242, %c0_144, %c0_145] : memref<1x8x8x128xf32, #tpu.memory_space<vmem>>, vector<1x1x8x128xf32>
    %244 = vector.shape_cast %243 : vector<1x1x8x128xf32> to vector<8x128xf32>
    %245 = vector.broadcast %235 : vector<1x128xf32> to vector<8x128xf32>
    %246 = arith.mulf %245, %241 : vector<8x128xf32>
    %247 = arith.addf %226, %246 : vector<8x128xf32>
    %248 = vector.broadcast %238 : vector<1x128xf32> to vector<8x128xf32>
    %249 = arith.mulf %248, %244 : vector<8x128xf32>
    %250 = arith.subf %247, %249 : vector<8x128xf32>
    %251 = vector.broadcast %235 : vector<1x128xf32> to vector<8x128xf32>
    %252 = arith.mulf %251, %244 : vector<8x128xf32>
    %253 = arith.addf %232, %252 : vector<8x128xf32>
    %254 = vector.broadcast %238 : vector<1x128xf32> to vector<8x128xf32>
    %255 = arith.mulf %254, %241 : vector<8x128xf32>
    %256 = arith.addf %253, %255 : vector<8x128xf32>
    %c2_i32_146 = arith.constant 2 : i32
    %c0_147 = arith.constant 0 : index
    %c1_148 = arith.constant 1 : index
    %257 = arith.index_cast %c2_i32_146 : i32 to index
    %c0_149 = arith.constant 0 : index
    %258 = vector.load %arg3[%c0_147, %c1_148, %257, %c0_149] : memref<1x2x8x128xf32, #tpu.memory_space<vmem>>, vector<1x1x1x128xf32>
    %259 = vector.shape_cast %258 : vector<1x1x1x128xf32> to vector<1x128xf32>
    %c0_150 = arith.constant 0 : index
    %c1_151 = arith.constant 1 : index
    %260 = arith.index_cast %c2_i32_146 : i32 to index
    %c0_152 = arith.constant 0 : index
    %261 = vector.load %arg4[%c0_150, %c1_151, %260, %c0_152] : memref<1x2x8x128xf32, #tpu.memory_space<vmem>>, vector<1x1x1x128xf32>
    %262 = vector.shape_cast %261 : vector<1x1x1x128xf32> to vector<1x128xf32>
    %c0_153 = arith.constant 0 : index
    %263 = arith.index_cast %c2_i32_146 : i32 to index
    %c0_154 = arith.constant 0 : index
    %c0_155 = arith.constant 0 : index
    %264 = vector.load %arg5[%c0_153, %263, %c0_154, %c0_155] : memref<1x8x8x128xf32, #tpu.memory_space<vmem>>, vector<1x1x8x128xf32>
    %265 = vector.shape_cast %264 : vector<1x1x8x128xf32> to vector<8x128xf32>
    %c0_156 = arith.constant 0 : index
    %266 = arith.index_cast %c2_i32_146 : i32 to index
    %c0_157 = arith.constant 0 : index
    %c0_158 = arith.constant 0 : index
    %267 = vector.load %arg6[%c0_156, %266, %c0_157, %c0_158] : memref<1x8x8x128xf32, #tpu.memory_space<vmem>>, vector<1x1x8x128xf32>
    %268 = vector.shape_cast %267 : vector<1x1x8x128xf32> to vector<8x128xf32>
    %269 = vector.broadcast %259 : vector<1x128xf32> to vector<8x128xf32>
    %270 = arith.mulf %269, %265 : vector<8x128xf32>
    %271 = arith.addf %250, %270 : vector<8x128xf32>
    %272 = vector.broadcast %262 : vector<1x128xf32> to vector<8x128xf32>
    %273 = arith.mulf %272, %268 : vector<8x128xf32>
    %274 = arith.subf %271, %273 : vector<8x128xf32>
    %275 = vector.broadcast %259 : vector<1x128xf32> to vector<8x128xf32>
    %276 = arith.mulf %275, %268 : vector<8x128xf32>
    %277 = arith.addf %256, %276 : vector<8x128xf32>
    %278 = vector.broadcast %262 : vector<1x128xf32> to vector<8x128xf32>
    %279 = arith.mulf %278, %265 : vector<8x128xf32>
    %280 = arith.addf %277, %279 : vector<8x128xf32>
    %c3_i32_159 = arith.constant 3 : i32
    %c0_160 = arith.constant 0 : index
    %c1_161 = arith.constant 1 : index
    %281 = arith.index_cast %c3_i32_159 : i32 to index
    %c0_162 = arith.constant 0 : index
    %282 = vector.load %arg3[%c0_160, %c1_161, %281, %c0_162] : memref<1x2x8x128xf32, #tpu.memory_space<vmem>>, vector<1x1x1x128xf32>
    %283 = vector.shape_cast %282 : vector<1x1x1x128xf32> to vector<1x128xf32>
    %c0_163 = arith.constant 0 : index
    %c1_164 = arith.constant 1 : index
    %284 = arith.index_cast %c3_i32_159 : i32 to index
    %c0_165 = arith.constant 0 : index
    %285 = vector.load %arg4[%c0_163, %c1_164, %284, %c0_165] : memref<1x2x8x128xf32, #tpu.memory_space<vmem>>, vector<1x1x1x128xf32>
    %286 = vector.shape_cast %285 : vector<1x1x1x128xf32> to vector<1x128xf32>
    %c0_166 = arith.constant 0 : index
    %287 = arith.index_cast %c3_i32_159 : i32 to index
    %c0_167 = arith.constant 0 : index
    %c0_168 = arith.constant 0 : index
    %288 = vector.load %arg5[%c0_166, %287, %c0_167, %c0_168] : memref<1x8x8x128xf32, #tpu.memory_space<vmem>>, vector<1x1x8x128xf32>
    %289 = vector.shape_cast %288 : vector<1x1x8x128xf32> to vector<8x128xf32>
    %c0_169 = arith.constant 0 : index
    %290 = arith.index_cast %c3_i32_159 : i32 to index
    %c0_170 = arith.constant 0 : index
    %c0_171 = arith.constant 0 : index
    %291 = vector.load %arg6[%c0_169, %290, %c0_170, %c0_171] : memref<1x8x8x128xf32, #tpu.memory_space<vmem>>, vector<1x1x8x128xf32>
    %292 = vector.shape_cast %291 : vector<1x1x8x128xf32> to vector<8x128xf32>
    %293 = vector.broadcast %283 : vector<1x128xf32> to vector<8x128xf32>
    %294 = arith.mulf %293, %289 : vector<8x128xf32>
    %295 = arith.addf %274, %294 : vector<8x128xf32>
    %296 = vector.broadcast %286 : vector<1x128xf32> to vector<8x128xf32>
    %297 = arith.mulf %296, %292 : vector<8x128xf32>
    %298 = arith.subf %295, %297 : vector<8x128xf32>
    %299 = vector.broadcast %283 : vector<1x128xf32> to vector<8x128xf32>
    %300 = arith.mulf %299, %292 : vector<8x128xf32>
    %301 = arith.addf %280, %300 : vector<8x128xf32>
    %302 = vector.broadcast %286 : vector<1x128xf32> to vector<8x128xf32>
    %303 = arith.mulf %302, %289 : vector<8x128xf32>
    %304 = arith.addf %301, %303 : vector<8x128xf32>
    %c4_i32_172 = arith.constant 4 : i32
    %c0_173 = arith.constant 0 : index
    %c1_174 = arith.constant 1 : index
    %305 = arith.index_cast %c4_i32_172 : i32 to index
    %c0_175 = arith.constant 0 : index
    %306 = vector.load %arg3[%c0_173, %c1_174, %305, %c0_175] : memref<1x2x8x128xf32, #tpu.memory_space<vmem>>, vector<1x1x1x128xf32>
    %307 = vector.shape_cast %306 : vector<1x1x1x128xf32> to vector<1x128xf32>
    %c0_176 = arith.constant 0 : index
    %c1_177 = arith.constant 1 : index
    %308 = arith.index_cast %c4_i32_172 : i32 to index
    %c0_178 = arith.constant 0 : index
    %309 = vector.load %arg4[%c0_176, %c1_177, %308, %c0_178] : memref<1x2x8x128xf32, #tpu.memory_space<vmem>>, vector<1x1x1x128xf32>
    %310 = vector.shape_cast %309 : vector<1x1x1x128xf32> to vector<1x128xf32>
    %c0_179 = arith.constant 0 : index
    %311 = arith.index_cast %c4_i32_172 : i32 to index
    %c0_180 = arith.constant 0 : index
    %c0_181 = arith.constant 0 : index
    %312 = vector.load %arg5[%c0_179, %311, %c0_180, %c0_181] : memref<1x8x8x128xf32, #tpu.memory_space<vmem>>, vector<1x1x8x128xf32>
    %313 = vector.shape_cast %312 : vector<1x1x8x128xf32> to vector<8x128xf32>
    %c0_182 = arith.constant 0 : index
    %314 = arith.index_cast %c4_i32_172 : i32 to index
    %c0_183 = arith.constant 0 : index
    %c0_184 = arith.constant 0 : index
    %315 = vector.load %arg6[%c0_182, %314, %c0_183, %c0_184] : memref<1x8x8x128xf32, #tpu.memory_space<vmem>>, vector<1x1x8x128xf32>
    %316 = vector.shape_cast %315 : vector<1x1x8x128xf32> to vector<8x128xf32>
    %317 = vector.broadcast %307 : vector<1x128xf32> to vector<8x128xf32>
    %318 = arith.mulf %317, %313 : vector<8x128xf32>
    %319 = arith.addf %298, %318 : vector<8x128xf32>
    %320 = vector.broadcast %310 : vector<1x128xf32> to vector<8x128xf32>
    %321 = arith.mulf %320, %316 : vector<8x128xf32>
    %322 = arith.subf %319, %321 : vector<8x128xf32>
    %323 = vector.broadcast %307 : vector<1x128xf32> to vector<8x128xf32>
    %324 = arith.mulf %323, %316 : vector<8x128xf32>
    %325 = arith.addf %304, %324 : vector<8x128xf32>
    %326 = vector.broadcast %310 : vector<1x128xf32> to vector<8x128xf32>
    %327 = arith.mulf %326, %313 : vector<8x128xf32>
    %328 = arith.addf %325, %327 : vector<8x128xf32>
    %c5_i32_185 = arith.constant 5 : i32
    %c0_186 = arith.constant 0 : index
    %c1_187 = arith.constant 1 : index
    %329 = arith.index_cast %c5_i32_185 : i32 to index
    %c0_188 = arith.constant 0 : index
    %330 = vector.load %arg3[%c0_186, %c1_187, %329, %c0_188] : memref<1x2x8x128xf32, #tpu.memory_space<vmem>>, vector<1x1x1x128xf32>
    %331 = vector.shape_cast %330 : vector<1x1x1x128xf32> to vector<1x128xf32>
    %c0_189 = arith.constant 0 : index
    %c1_190 = arith.constant 1 : index
    %332 = arith.index_cast %c5_i32_185 : i32 to index
    %c0_191 = arith.constant 0 : index
    %333 = vector.load %arg4[%c0_189, %c1_190, %332, %c0_191] : memref<1x2x8x128xf32, #tpu.memory_space<vmem>>, vector<1x1x1x128xf32>
    %334 = vector.shape_cast %333 : vector<1x1x1x128xf32> to vector<1x128xf32>
    %c0_192 = arith.constant 0 : index
    %335 = arith.index_cast %c5_i32_185 : i32 to index
    %c0_193 = arith.constant 0 : index
    %c0_194 = arith.constant 0 : index
    %336 = vector.load %arg5[%c0_192, %335, %c0_193, %c0_194] : memref<1x8x8x128xf32, #tpu.memory_space<vmem>>, vector<1x1x8x128xf32>
    %337 = vector.shape_cast %336 : vector<1x1x8x128xf32> to vector<8x128xf32>
    %c0_195 = arith.constant 0 : index
    %338 = arith.index_cast %c5_i32_185 : i32 to index
    %c0_196 = arith.constant 0 : index
    %c0_197 = arith.constant 0 : index
    %339 = vector.load %arg6[%c0_195, %338, %c0_196, %c0_197] : memref<1x8x8x128xf32, #tpu.memory_space<vmem>>, vector<1x1x8x128xf32>
    %340 = vector.shape_cast %339 : vector<1x1x8x128xf32> to vector<8x128xf32>
    %341 = vector.broadcast %331 : vector<1x128xf32> to vector<8x128xf32>
    %342 = arith.mulf %341, %337 : vector<8x128xf32>
    %343 = arith.addf %322, %342 : vector<8x128xf32>
    %344 = vector.broadcast %334 : vector<1x128xf32> to vector<8x128xf32>
    %345 = arith.mulf %344, %340 : vector<8x128xf32>
    %346 = arith.subf %343, %345 : vector<8x128xf32>
    %347 = vector.broadcast %331 : vector<1x128xf32> to vector<8x128xf32>
    %348 = arith.mulf %347, %340 : vector<8x128xf32>
    %349 = arith.addf %328, %348 : vector<8x128xf32>
    %350 = vector.broadcast %334 : vector<1x128xf32> to vector<8x128xf32>
    %351 = arith.mulf %350, %337 : vector<8x128xf32>
    %352 = arith.addf %349, %351 : vector<8x128xf32>
    %c6_i32_198 = arith.constant 6 : i32
    %c0_199 = arith.constant 0 : index
    %c1_200 = arith.constant 1 : index
    %353 = arith.index_cast %c6_i32_198 : i32 to index
    %c0_201 = arith.constant 0 : index
    %354 = vector.load %arg3[%c0_199, %c1_200, %353, %c0_201] : memref<1x2x8x128xf32, #tpu.memory_space<vmem>>, vector<1x1x1x128xf32>
    %355 = vector.shape_cast %354 : vector<1x1x1x128xf32> to vector<1x128xf32>
    %c0_202 = arith.constant 0 : index
    %c1_203 = arith.constant 1 : index
    %356 = arith.index_cast %c6_i32_198 : i32 to index
    %c0_204 = arith.constant 0 : index
    %357 = vector.load %arg4[%c0_202, %c1_203, %356, %c0_204] : memref<1x2x8x128xf32, #tpu.memory_space<vmem>>, vector<1x1x1x128xf32>
    %358 = vector.shape_cast %357 : vector<1x1x1x128xf32> to vector<1x128xf32>
    %c0_205 = arith.constant 0 : index
    %359 = arith.index_cast %c6_i32_198 : i32 to index
    %c0_206 = arith.constant 0 : index
    %c0_207 = arith.constant 0 : index
    %360 = vector.load %arg5[%c0_205, %359, %c0_206, %c0_207] : memref<1x8x8x128xf32, #tpu.memory_space<vmem>>, vector<1x1x8x128xf32>
    %361 = vector.shape_cast %360 : vector<1x1x8x128xf32> to vector<8x128xf32>
    %c0_208 = arith.constant 0 : index
    %362 = arith.index_cast %c6_i32_198 : i32 to index
    %c0_209 = arith.constant 0 : index
    %c0_210 = arith.constant 0 : index
    %363 = vector.load %arg6[%c0_208, %362, %c0_209, %c0_210] : memref<1x8x8x128xf32, #tpu.memory_space<vmem>>, vector<1x1x8x128xf32>
    %364 = vector.shape_cast %363 : vector<1x1x8x128xf32> to vector<8x128xf32>
    %365 = vector.broadcast %355 : vector<1x128xf32> to vector<8x128xf32>
    %366 = arith.mulf %365, %361 : vector<8x128xf32>
    %367 = arith.addf %346, %366 : vector<8x128xf32>
    %368 = vector.broadcast %358 : vector<1x128xf32> to vector<8x128xf32>
    %369 = arith.mulf %368, %364 : vector<8x128xf32>
    %370 = arith.subf %367, %369 : vector<8x128xf32>
    %371 = vector.broadcast %355 : vector<1x128xf32> to vector<8x128xf32>
    %372 = arith.mulf %371, %364 : vector<8x128xf32>
    %373 = arith.addf %352, %372 : vector<8x128xf32>
    %374 = vector.broadcast %358 : vector<1x128xf32> to vector<8x128xf32>
    %375 = arith.mulf %374, %361 : vector<8x128xf32>
    %376 = arith.addf %373, %375 : vector<8x128xf32>
    %c7_i32_211 = arith.constant 7 : i32
    %c0_212 = arith.constant 0 : index
    %c1_213 = arith.constant 1 : index
    %377 = arith.index_cast %c7_i32_211 : i32 to index
    %c0_214 = arith.constant 0 : index
    %378 = vector.load %arg3[%c0_212, %c1_213, %377, %c0_214] : memref<1x2x8x128xf32, #tpu.memory_space<vmem>>, vector<1x1x1x128xf32>
    %379 = vector.shape_cast %378 : vector<1x1x1x128xf32> to vector<1x128xf32>
    %c0_215 = arith.constant 0 : index
    %c1_216 = arith.constant 1 : index
    %380 = arith.index_cast %c7_i32_211 : i32 to index
    %c0_217 = arith.constant 0 : index
    %381 = vector.load %arg4[%c0_215, %c1_216, %380, %c0_217] : memref<1x2x8x128xf32, #tpu.memory_space<vmem>>, vector<1x1x1x128xf32>
    %382 = vector.shape_cast %381 : vector<1x1x1x128xf32> to vector<1x128xf32>
    %c0_218 = arith.constant 0 : index
    %383 = arith.index_cast %c7_i32_211 : i32 to index
    %c0_219 = arith.constant 0 : index
    %c0_220 = arith.constant 0 : index
    %384 = vector.load %arg5[%c0_218, %383, %c0_219, %c0_220] : memref<1x8x8x128xf32, #tpu.memory_space<vmem>>, vector<1x1x8x128xf32>
    %385 = vector.shape_cast %384 : vector<1x1x8x128xf32> to vector<8x128xf32>
    %c0_221 = arith.constant 0 : index
    %386 = arith.index_cast %c7_i32_211 : i32 to index
    %c0_222 = arith.constant 0 : index
    %c0_223 = arith.constant 0 : index
    %387 = vector.load %arg6[%c0_221, %386, %c0_222, %c0_223] : memref<1x8x8x128xf32, #tpu.memory_space<vmem>>, vector<1x1x8x128xf32>
    %388 = vector.shape_cast %387 : vector<1x1x8x128xf32> to vector<8x128xf32>
    %389 = vector.broadcast %379 : vector<1x128xf32> to vector<8x128xf32>
    %390 = arith.mulf %389, %385 : vector<8x128xf32>
    %391 = arith.addf %370, %390 : vector<8x128xf32>
    %392 = vector.broadcast %382 : vector<1x128xf32> to vector<8x128xf32>
    %393 = arith.mulf %392, %388 : vector<8x128xf32>
    %394 = arith.subf %391, %393 : vector<8x128xf32>
    %395 = vector.broadcast %379 : vector<1x128xf32> to vector<8x128xf32>
    %396 = arith.mulf %395, %388 : vector<8x128xf32>
    %397 = arith.addf %376, %396 : vector<8x128xf32>
    %398 = vector.broadcast %382 : vector<1x128xf32> to vector<8x128xf32>
    %399 = arith.mulf %398, %385 : vector<8x128xf32>
    %400 = arith.addf %397, %399 : vector<8x128xf32>
    %c8_i32_224 = arith.constant 8 : i32
    %c0_225 = arith.constant 0 : index
    %c1_226 = arith.constant 1 : index
    %c0_227 = arith.constant 0 : index
    %c0_228 = arith.constant 0 : index
    %401 = vector.load %arg7[%c0_225, %c1_226, %c0_227, %c0_228] : memref<1x2x8x128xf32, #tpu.memory_space<vmem>>, vector<1x1x8x128xf32>
    %402 = vector.shape_cast %401 : vector<1x1x8x128xf32> to vector<8x128xf32>
    %403 = vector.shape_cast %394 : vector<8x128xf32> to vector<1x1x8x128xf32>
    tpu.vector_store %arg7[%c0_225, %c1_226, %c0_227, %c0_228], %403 {strides = array<i32>} : memref<1x2x8x128xf32, #tpu.memory_space<vmem>>, vector<1x1x8x128xf32>,
    %c0_229 = arith.constant 0 : index
    %c1_230 = arith.constant 1 : index
    %c0_231 = arith.constant 0 : index
    %c0_232 = arith.constant 0 : index
    %404 = vector.load %arg8[%c0_229, %c1_230, %c0_231, %c0_232] : memref<1x2x8x128xf32, #tpu.memory_space<vmem>>, vector<1x1x8x128xf32>
    %405 = vector.shape_cast %404 : vector<1x1x8x128xf32> to vector<8x128xf32>
    %406 = vector.shape_cast %400 : vector<8x128xf32> to vector<1x1x8x128xf32>
    tpu.vector_store %arg8[%c0_229, %c1_230, %c0_231, %c0_232], %406 {strides = array<i32>} : memref<1x2x8x128xf32, #tpu.memory_space<vmem>>, vector<1x1x8x128xf32>,
    return
  }
  func.func @transform_0(%arg0: i32, %arg1: i32, %arg2: i32) -> (i32, i32, i32, i32) {
    %c0_i32 = arith.constant 0 : i32
    %c0_i32_0 = arith.constant 0 : i32
    return %arg0, %c0_i32, %arg2, %arg1 : i32, i32, i32, i32
  }
  func.func @transform_1(%arg0: i32, %arg1: i32, %arg2: i32) -> (i32, i32, i32, i32) {
    %c0_i32 = arith.constant 0 : i32
    %c0_i32_0 = arith.constant 0 : i32
    return %arg0, %c0_i32, %arg2, %arg1 : i32, i32, i32, i32
  }
  func.func @transform_2(%arg0: i32, %arg1: i32, %arg2: i32) -> (i32, i32, i32, i32) {
    %c0_i32 = arith.constant 0 : i32
    %c0_i32_0 = arith.constant 0 : i32
    return %arg0, %arg2, %c0_i32, %arg1 : i32, i32, i32, i32
  }
  func.func @transform_3(%arg0: i32, %arg1: i32, %arg2: i32) -> (i32, i32, i32, i32) {
    %c0_i32 = arith.constant 0 : i32
    %c0_i32_0 = arith.constant 0 : i32
    return %arg0, %arg2, %c0_i32, %arg1 : i32, i32, i32, i32
  }
  func.func @transform_4(%arg0: i32, %arg1: i32, %arg2: i32) -> (i32, i32, i32, i32) {
    %c0_i32 = arith.constant 0 : i32
    %c0_i32_0 = arith.constant 0 : i32
    %c0_i32_1 = arith.constant 0 : i32
    return %arg0, %c0_i32, %c0_i32_0, %arg1 : i32, i32, i32, i32
  }
  func.func @transform_5(%arg0: i32, %arg1: i32, %arg2: i32) -> (i32, i32, i32, i32) {
    %c0_i32 = arith.constant 0 : i32
    %c0_i32_0 = arith.constant 0 : i32
    %c0_i32_1 = arith.constant 0 : i32
    return %arg0, %c0_i32, %c0_i32_0, %arg1 : i32, i32, i32, i32
  }
}

module attributes {stable_mosaic.version = 11 : i64} {
  func.func @_linear_residual_kernel(%arg0: i32, %arg1: memref<8x512xf32, #tpu.memory_space<vmem>>, %arg2: memref<8x8xf32, #tpu.memory_space<vmem>>, %arg3: memref<8x1xf32, #tpu.memory_space<vmem>>, %arg4: memref<8x512xf32, #tpu.memory_space<vmem>>, %arg5: memref<8x512xf32, #tpu.memory_space<vmem>>) attributes {dimension_semantics = [#tpu.dimension_semantics<parallel>], iteration_bounds = array<i64: 2>, scalar_prefetch = 0 : i64, scratch_operands = 0 : i64, tpu.core_type = #tpu.core_type<tc>, window_params = [{transform_indices = @transform_0, window_bounds = array<i64: 8, 512>}, {pipeline_mode = #tpu.pipeline_mode<synchronous>, transform_indices = @transform_1, window_bounds = array<i64: 8, 8>}, {pipeline_mode = #tpu.pipeline_mode<synchronous>, transform_indices = @transform_2, window_bounds = array<i64: 8, 1>}, {transform_indices = @transform_3, window_bounds = array<i64: 8, 512>}, {transform_indices = @transform_4, window_bounds = array<i64: 8, 512>}]} {
    %c0 = arith.constant 0 : index
    %c0_0 = arith.constant 0 : index
    %0 = vector.load %arg2[%c0, %c0_0] : memref<8x8xf32, #tpu.memory_space<vmem>>, vector<8x8xf32>
    %1 = arith.truncf %0 : vector<8x8xf32> to vector<8x8xbf16>
    %c0_1 = arith.constant 0 : index
    %c0_2 = arith.constant 0 : index
    %2 = vector.load %arg1[%c0_1, %c0_2] : memref<8x512xf32, #tpu.memory_space<vmem>>, vector<8x512xf32>
    %3 = arith.truncf %2 : vector<8x512xf32> to vector<8x512xbf16>
    %cst = arith.constant dense<0.000000e+00> : vector<8x512xf32>
    %4 = tpu.matmul %1, %3, %cst {dimension_numbers = #tpu.dot_dimension_numbers<[1], [0], [0], [1], [0, 0, 1, 1], [], []>} : vector<8x8xbf16>, vector<8x512xbf16>, vector<8x512xf32> -> vector<8x512xf32>
    %c0_3 = arith.constant 0 : index
    %c0_4 = arith.constant 0 : index
    %5 = vector.load %arg3[%c0_3, %c0_4] : memref<8x1xf32, #tpu.memory_space<vmem>>, vector<8x1xf32>
    %6 = vector.broadcast %5 : vector<8x1xf32> to vector<8x512xf32>
    %7 = arith.addf %4, %6 : vector<8x512xf32>
    %c0_5 = arith.constant 0 : index
    %c0_6 = arith.constant 0 : index
    %8 = vector.load %arg4[%c0_5, %c0_6] : memref<8x512xf32, #tpu.memory_space<vmem>>, vector<8x512xf32>
    %9 = arith.addf %7, %8 : vector<8x512xf32>
    %cst_7 = arith.constant 5.000000e-01 : f32
    %10 = vector.broadcast %cst_7 : f32 to vector<8x512xf32>
    %11 = arith.mulf %10, %9 : vector<8x512xf32>
    %cst_8 = arith.constant 4.471500e-02 : f32
    %12 = vector.broadcast %cst_8 : f32 to vector<8x512xf32>
    %13 = arith.mulf %12, %9 : vector<8x512xf32>
    %14 = arith.mulf %13, %9 : vector<8x512xf32>
    %15 = arith.mulf %14, %9 : vector<8x512xf32>
    %16 = arith.addf %9, %15 : vector<8x512xf32>
    %cst_9 = arith.constant 0.797884583 : f32
    %17 = vector.broadcast %cst_9 : f32 to vector<8x512xf32>
    %18 = arith.mulf %17, %16 : vector<8x512xf32>
    %19 = math.tanh %18 : vector<8x512xf32>
    %cst_10 = arith.constant 1.000000e+00 : f32
    %20 = vector.broadcast %cst_10 : f32 to vector<8x512xf32>
    %21 = arith.addf %20, %19 : vector<8x512xf32>
    %22 = arith.mulf %11, %21 : vector<8x512xf32>
    %c0_11 = arith.constant 0 : index
    %c0_12 = arith.constant 0 : index
    %23 = vector.load %arg5[%c0_11, %c0_12] : memref<8x512xf32, #tpu.memory_space<vmem>>, vector<8x512xf32>
    tpu.vector_store %arg5[%c0_11, %c0_12], %22 {strides = array<i32>} : memref<8x512xf32, #tpu.memory_space<vmem>>, vector<8x512xf32>,
    return
  }
  func.func @transform_0(%arg0: i32) -> (i32, i32) {
    %c0_i32 = arith.constant 0 : i32
    %c0_i32_0 = arith.constant 0 : i32
    return %c0_i32, %arg0 : i32, i32
  }
  func.func @transform_1(%arg0: i32) -> (i32, i32) {
    %c0_i32 = arith.constant 0 : i32
    %c0_i32_0 = arith.constant 0 : i32
    %c0_i32_1 = arith.constant 0 : i32
    return %c0_i32, %c0_i32_0 : i32, i32
  }
  func.func @transform_2(%arg0: i32) -> (i32, i32) {
    %c0_i32 = arith.constant 0 : i32
    %c0_i32_0 = arith.constant 0 : i32
    %c0_i32_1 = arith.constant 0 : i32
    return %c0_i32, %c0_i32_0 : i32, i32
  }
  func.func @transform_3(%arg0: i32) -> (i32, i32) {
    %c0_i32 = arith.constant 0 : i32
    %c0_i32_0 = arith.constant 0 : i32
    return %c0_i32, %arg0 : i32, i32
  }
  func.func @transform_4(%arg0: i32) -> (i32, i32) {
    %c0_i32 = arith.constant 0 : i32
    %c0_i32_0 = arith.constant 0 : i32
    return %c0_i32, %arg0 : i32, i32
  }
}

module attributes {stable_mosaic.version = 11 : i64} {
  func.func @_linear_residual_kernel(%arg0: i32, %arg1: memref<8x512xf32, #tpu.memory_space<vmem>>, %arg2: memref<8x8xf32, #tpu.memory_space<vmem>>, %arg3: memref<8x1xf32, #tpu.memory_space<vmem>>, %arg4: memref<8x512xf32, #tpu.memory_space<vmem>>, %arg5: memref<8x512xf32, #tpu.memory_space<vmem>>) attributes {dimension_semantics = [#tpu.dimension_semantics<parallel>], iteration_bounds = array<i64: 2>, scalar_prefetch = 0 : i64, scratch_operands = 0 : i64, tpu.core_type = #tpu.core_type<tc>, window_params = [{transform_indices = @transform_0, window_bounds = array<i64: 8, 512>}, {pipeline_mode = #tpu.pipeline_mode<synchronous>, transform_indices = @transform_1, window_bounds = array<i64: 8, 8>}, {pipeline_mode = #tpu.pipeline_mode<synchronous>, transform_indices = @transform_2, window_bounds = array<i64: 8, 1>}, {transform_indices = @transform_3, window_bounds = array<i64: 8, 512>}, {transform_indices = @transform_4, window_bounds = array<i64: 8, 512>}]} {
    %c0 = arith.constant 0 : index
    %c0_0 = arith.constant 0 : index
    %0 = vector.load %arg2[%c0, %c0_0] : memref<8x8xf32, #tpu.memory_space<vmem>>, vector<8x8xf32>
    %1 = arith.truncf %0 : vector<8x8xf32> to vector<8x8xbf16>
    %c0_1 = arith.constant 0 : index
    %c0_2 = arith.constant 0 : index
    %2 = vector.load %arg1[%c0_1, %c0_2] : memref<8x512xf32, #tpu.memory_space<vmem>>, vector<8x512xf32>
    %3 = arith.truncf %2 : vector<8x512xf32> to vector<8x512xbf16>
    %cst = arith.constant dense<0.000000e+00> : vector<8x512xf32>
    %4 = tpu.matmul %1, %3, %cst {dimension_numbers = #tpu.dot_dimension_numbers<[1], [0], [0], [1], [0, 0, 1, 1], [], []>} : vector<8x8xbf16>, vector<8x512xbf16>, vector<8x512xf32> -> vector<8x512xf32>
    %c0_3 = arith.constant 0 : index
    %c0_4 = arith.constant 0 : index
    %5 = vector.load %arg3[%c0_3, %c0_4] : memref<8x1xf32, #tpu.memory_space<vmem>>, vector<8x1xf32>
    %6 = vector.broadcast %5 : vector<8x1xf32> to vector<8x512xf32>
    %7 = arith.addf %4, %6 : vector<8x512xf32>
    %c0_5 = arith.constant 0 : index
    %c0_6 = arith.constant 0 : index
    %8 = vector.load %arg4[%c0_5, %c0_6] : memref<8x512xf32, #tpu.memory_space<vmem>>, vector<8x512xf32>
    %9 = arith.addf %7, %8 : vector<8x512xf32>
    %c0_7 = arith.constant 0 : index
    %c0_8 = arith.constant 0 : index
    %10 = vector.load %arg5[%c0_7, %c0_8] : memref<8x512xf32, #tpu.memory_space<vmem>>, vector<8x512xf32>
    tpu.vector_store %arg5[%c0_7, %c0_8], %9 {strides = array<i32>} : memref<8x512xf32, #tpu.memory_space<vmem>>, vector<8x512xf32>,
    return
  }
  func.func @transform_0(%arg0: i32) -> (i32, i32) {
    %c0_i32 = arith.constant 0 : i32
    %c0_i32_0 = arith.constant 0 : i32
    return %c0_i32, %arg0 : i32, i32
  }
  func.func @transform_1(%arg0: i32) -> (i32, i32) {
    %c0_i32 = arith.constant 0 : i32
    %c0_i32_0 = arith.constant 0 : i32
    %c0_i32_1 = arith.constant 0 : i32
    return %c0_i32, %c0_i32_0 : i32, i32
  }
  func.func @transform_2(%arg0: i32) -> (i32, i32) {
    %c0_i32 = arith.constant 0 : i32
    %c0_i32_0 = arith.constant 0 : i32
    %c0_i32_1 = arith.constant 0 : i32
    return %c0_i32, %c0_i32_0 : i32, i32
  }
  func.func @transform_3(%arg0: i32) -> (i32, i32) {
    %c0_i32 = arith.constant 0 : i32
    %c0_i32_0 = arith.constant 0 : i32
    return %c0_i32, %arg0 : i32, i32
  }
  func.func @transform_4(%arg0: i32) -> (i32, i32) {
    %c0_i32 = arith.constant 0 : i32
    %c0_i32_0 = arith.constant 0 : i32
    return %c0_i32, %arg0 : i32, i32
  }
}

module attributes {stable_mosaic.version = 11 : i64} {
  func.func @_mlp_kernel(%arg0: i32, %arg1: memref<8x512xf32, #tpu.memory_space<vmem>>, %arg2: memref<32x8xf32, #tpu.memory_space<vmem>>, %arg3: memref<32x1xf32, #tpu.memory_space<vmem>>, %arg4: memref<8x32xf32, #tpu.memory_space<vmem>>, %arg5: memref<8x1xf32, #tpu.memory_space<vmem>>, %arg6: memref<8x512xf32, #tpu.memory_space<vmem>>) attributes {dimension_semantics = [#tpu.dimension_semantics<parallel>], iteration_bounds = array<i64: 2>, scalar_prefetch = 0 : i64, scratch_operands = 0 : i64, tpu.core_type = #tpu.core_type<tc>, window_params = [{transform_indices = @transform_0, window_bounds = array<i64: 8, 512>}, {pipeline_mode = #tpu.pipeline_mode<synchronous>, transform_indices = @transform_1, window_bounds = array<i64: 32, 8>}, {pipeline_mode = #tpu.pipeline_mode<synchronous>, transform_indices = @transform_2, window_bounds = array<i64: 32, 1>}, {pipeline_mode = #tpu.pipeline_mode<synchronous>, transform_indices = @transform_3, window_bounds = array<i64: 8, 32>}, {pipeline_mode = #tpu.pipeline_mode<synchronous>, transform_indices = @transform_4, window_bounds = array<i64: 8, 1>}, {transform_indices = @transform_5, window_bounds = array<i64: 8, 512>}]} {
    %c0 = arith.constant 0 : index
    %c0_0 = arith.constant 0 : index
    %0 = vector.load %arg2[%c0, %c0_0] : memref<32x8xf32, #tpu.memory_space<vmem>>, vector<32x8xf32>
    %1 = arith.truncf %0 : vector<32x8xf32> to vector<32x8xbf16>
    %c0_1 = arith.constant 0 : index
    %c0_2 = arith.constant 0 : index
    %2 = vector.load %arg1[%c0_1, %c0_2] : memref<8x512xf32, #tpu.memory_space<vmem>>, vector<8x512xf32>
    %3 = arith.truncf %2 : vector<8x512xf32> to vector<8x512xbf16>
    %cst = arith.constant dense<0.000000e+00> : vector<32x512xf32>
    %4 = tpu.matmul %1, %3, %cst {dimension_numbers = #tpu.dot_dimension_numbers<[1], [0], [0], [1], [0, 0, 1, 1], [], []>} : vector<32x8xbf16>, vector<8x512xbf16>, vector<32x512xf32> -> vector<32x512xf32>
    %c0_3 = arith.constant 0 : index
    %c0_4 = arith.constant 0 : index
    %5 = vector.load %arg3[%c0_3, %c0_4] : memref<32x1xf32, #tpu.memory_space<vmem>>, vector<32x1xf32>
    %6 = vector.broadcast %5 : vector<32x1xf32> to vector<32x512xf32>
    %7 = arith.addf %4, %6 : vector<32x512xf32>
    %cst_5 = arith.constant 5.000000e-01 : f32
    %8 = vector.broadcast %cst_5 : f32 to vector<32x512xf32>
    %9 = arith.mulf %8, %7 : vector<32x512xf32>
    %cst_6 = arith.constant 4.471500e-02 : f32
    %10 = vector.broadcast %cst_6 : f32 to vector<32x512xf32>
    %11 = arith.mulf %10, %7 : vector<32x512xf32>
    %12 = arith.mulf %11, %7 : vector<32x512xf32>
    %13 = arith.mulf %12, %7 : vector<32x512xf32>
    %14 = arith.addf %7, %13 : vector<32x512xf32>
    %cst_7 = arith.constant 0.797884583 : f32
    %15 = vector.broadcast %cst_7 : f32 to vector<32x512xf32>
    %16 = arith.mulf %15, %14 : vector<32x512xf32>
    %17 = math.tanh %16 : vector<32x512xf32>
    %cst_8 = arith.constant 1.000000e+00 : f32
    %18 = vector.broadcast %cst_8 : f32 to vector<32x512xf32>
    %19 = arith.addf %18, %17 : vector<32x512xf32>
    %20 = arith.mulf %9, %19 : vector<32x512xf32>
    %c0_9 = arith.constant 0 : index
    %c0_10 = arith.constant 0 : index
    %21 = vector.load %arg4[%c0_9, %c0_10] : memref<8x32xf32, #tpu.memory_space<vmem>>, vector<8x32xf32>
    %22 = arith.truncf %21 : vector<8x32xf32> to vector<8x32xbf16>
    %23 = arith.truncf %20 : vector<32x512xf32> to vector<32x512xbf16>
    %cst_11 = arith.constant dense<0.000000e+00> : vector<8x512xf32>
    %24 = tpu.matmul %22, %23, %cst_11 {dimension_numbers = #tpu.dot_dimension_numbers<[1], [0], [0], [1], [0, 0, 1, 1], [], []>} : vector<8x32xbf16>, vector<32x512xbf16>, vector<8x512xf32> -> vector<8x512xf32>
    %c0_12 = arith.constant 0 : index
    %c0_13 = arith.constant 0 : index
    %25 = vector.load %arg5[%c0_12, %c0_13] : memref<8x1xf32, #tpu.memory_space<vmem>>, vector<8x1xf32>
    %26 = vector.broadcast %25 : vector<8x1xf32> to vector<8x512xf32>
    %27 = arith.addf %24, %26 : vector<8x512xf32>
    %c0_14 = arith.constant 0 : index
    %c0_15 = arith.constant 0 : index
    %28 = vector.load %arg6[%c0_14, %c0_15] : memref<8x512xf32, #tpu.memory_space<vmem>>, vector<8x512xf32>
    tpu.vector_store %arg6[%c0_14, %c0_15], %27 {strides = array<i32>} : memref<8x512xf32, #tpu.memory_space<vmem>>, vector<8x512xf32>,
    return
  }
  func.func @transform_0(%arg0: i32) -> (i32, i32) {
    %c0_i32 = arith.constant 0 : i32
    %c0_i32_0 = arith.constant 0 : i32
    return %c0_i32, %arg0 : i32, i32
  }
  func.func @transform_1(%arg0: i32) -> (i32, i32) {
    %c0_i32 = arith.constant 0 : i32
    %c0_i32_0 = arith.constant 0 : i32
    %c0_i32_1 = arith.constant 0 : i32
    return %c0_i32, %c0_i32_0 : i32, i32
  }
  func.func @transform_2(%arg0: i32) -> (i32, i32) {
    %c0_i32 = arith.constant 0 : i32
    %c0_i32_0 = arith.constant 0 : i32
    %c0_i32_1 = arith.constant 0 : i32
    return %c0_i32, %c0_i32_0 : i32, i32
  }
  func.func @transform_3(%arg0: i32) -> (i32, i32) {
    %c0_i32 = arith.constant 0 : i32
    %c0_i32_0 = arith.constant 0 : i32
    %c0_i32_1 = arith.constant 0 : i32
    return %c0_i32, %c0_i32_0 : i32, i32
  }
  func.func @transform_4(%arg0: i32) -> (i32, i32) {
    %c0_i32 = arith.constant 0 : i32
    %c0_i32_0 = arith.constant 0 : i32
    %c0_i32_1 = arith.constant 0 : i32
    return %c0_i32, %c0_i32_0 : i32, i32
  }
  func.func @transform_5(%arg0: i32) -> (i32, i32) {
    %c0_i32 = arith.constant 0 : i32
    %c0_i32_0 = arith.constant 0 : i32
    return %c0_i32, %arg0 : i32, i32
  }
}

</mosaic_0001>

<bundles_post_ra>
// kernel: _lambda_.8
= control target key start
LH: loop header
LB: loop body
LE: loop exit
PB: predicated region body
PF: predicated region fallthrough
CT: control target
= control target key end

     0   :  { %s410_s12 = smov 0   ;;  %s433_s0 = inlined_call_operand.vmem [shape: f32[4,1024], index: 0, kind: input, shape index: {}]   ;;  %s434_s1 = inlined_call_operand.vmem [shape: f32[8,4], index: 1, kind: input, shape index: {}]   ;;  %s435_s2 = inlined_call_operand.vmem [shape: f32[8,1], index: 2, kind: input, shape index: {}]   ;;  %s436_s3 = inlined_call_operand.vmem [shape: f32[8,1024], index: 3, kind: output, shape index: {}]  }
   0x1 LB: > { %s354_s13 = sadd.s32 4294967295, %s387_s12   ;;  %p358_p0 = scmp.ge.s32.totalorder %s387_s12, 1  ;;  %s387_s12 = sphi %s410_s12, %s13_s12  }
   0x2   : > { %p138_p1 = scmp.lt.s32.totalorder %s387_s12, 3 }
   0x4   : > { %p139_p2 = pnand %p358_p0, %p138_p1 }
   0x5   : > { %s359_s14 = sshll.u32 (!%p139_p2), %s354_s13, 2  ;;  %v189_v0 = vld [vmem:[%s435_s2] sm:$0xff] (!%p139_p2)  ;;  %v389_v1 = vmov (!%p139_p2), 0   ;;  %vm199_vm0 = vcmask (!%p139_p2), 1041408   ;;  %vm195_vm1 = vcmask (!%p139_p2), 31744  }
   0x6   : > { %142 = sbr.rel (%p139_p2) target bundleno = 241 (0xf1), region = 32  ;;  %p163_p3 = scmp.lt.s32.totalorder (!%p139_p2), %s359_s14, 7  ;;  %244 = vmatprep.mubr.bf16.mxu0 (!%p139_p2), %v389_v1  ;;  %285 = vmatprep.mubr.bf16.mxu1 (!%p139_p2), %v389_v1  ;;  %v175_v8 = vld [vmem:[%s434_s1] sm:$0xff] (!%p139_p2) }
   0x7   : > { %378 = vset.pattern.permute.xlu0 (!%p139_p2), %v389_v1  ;;  %v176_v13 = vpack.c.bf16 (!%p139_p2), %v175_v8, %v175_v8 }
   0x8   : > { %192 = vperm.xlu0 (!%p139_p2), %378, %v189_v0  }
   0xd   : > { %s438_s14 = smov (!%p163_p3, %s359_s14), 7 }
   0xe   : > { %s360_s17 = sshll.u32 %s438_s14, 2  ;;  %s362_s23 = sshll.u32 %s438_s14, 3 }
   0xf   : > { %s166_s20 = scalar_lea.vmem %s433_s0, %s360_s17  ;;  %s172_s26 = scalar_lea.vmem %s436_s3, %s362_s23 }
  0x10   : > { %v177_v2 = vld [vmem:[%s166_s20] sm:$0xff]  ;;  %v178_v3 = vld [vmem:[%s166_s20 + $0x8] sm:$0xff] }
  0x11   : > { %v181_v4 = vcombine.high %v177_v2, %v177_v2  ;;  %v182_v5 = vcombine.high %v178_v3, %v178_v3  ;;  %v185_v6 = vpack.c.bf16 %v177_v2, %v177_v2  ;;  %v187_v7 = vpack.c.bf16 %v178_v3, %v178_v3 }
  0x13   : > { %v186_v9 = vpack.c.bf16 %v181_v4, %v181_v4  ;;  %v188_v10 = vpack.c.bf16 %v182_v5, %v182_v5  ;;  %v201_v11 = vsel %vm199_vm0, %v185_v6, 0  ;;  %v207_v12 = vsel %vm199_vm0, %v187_v7, 0 }
  0x15   : > { %363 = vmatprep.subr.msk.bf16.mxu0 %vm199_vm0, %v186_v9  ;;  %365 = vmatprep.subr.msk.bf16.mxu1 %vm199_vm0, %v188_v10 }
  0x16   : > { %213 = vmatpush1.bf16.msra.mxu0 %v201_v11  ;;  %254 = vmatpush1.bf16.msra.mxu1 %v207_v12 }
  0x19   : > { %364 = vmatmul.mubr.msk.bf16.vlgmr.msra.gmra.mrb[0].mxu0 %vm195_vm1, %v176_v13  ;;  %366 = vmatmul.mubr.msk.bf16.vlgmr.msra.gmra.mrb[0].mxu1 %vm195_vm1, %v176_v13 }
  0x87   : > { %v193_v14 = vpop.permute.xlu0 %192 }
  0xec   : > { %v246_v15 = vpop.f32.mrb[0].mxu0  ;;  %v287_v16 = vpop.f32.mrb[0].mxu1 }
  0xed   : > { %v247_v17 = vadd.f32 %v246_v15, %v193_v14  ;;  %v248_v18 = vpop.f32.mrb[1].mxu0  ;;  %v289_v19 = vpop.f32.mrb[1].mxu1  ;;  %v288_v23 = vadd.f32 %v287_v16, %v193_v14 }
  0xee   : > { %v249_v20 = vadd.f32 %v248_v18, %v193_v14  ;;  %v250_v21 = vpop.f32.mrb[2].mxu0  ;;  %v291_v22 = vpop.f32.mrb[2].mxu1  ;;  %v290_v26 = vadd.f32 %v289_v19, %v193_v14 }
  0xef   : > { %294 = vst [vmem:[%s172_s26] sm:$0xff] %v247_v17  ;;  %v251_v24 = vpop.f32.mrb[3].mxu0  ;;  %v292_v25 = vpop.f32.mrb[3].mxu1  ;;  %296 = vst [vmem:[%s172_s26 + $0x10] sm:$0xff] %v288_v23 }
  0xf0   : > { %295 = vst [vmem:[%s172_s26 + $0x8] sm:$0xff] %v249_v20  ;;  %297 = vst [vmem:[%s172_s26 + $0x18] sm:$0xff] %v290_v26 }
  0xf1 PF: > { %s13_s12 = sadd.s32 1, %s387_s12  }
  0xf2   : > { %p10_p4 = scmp.ge.s32.totalorder %s13_s12, 4  }
  0xf4   :  { %12 = sbr.rel (!%p10_p4) target bundleno = 1 (0x1), region = 62 }

// kernel: _lambda_.9
= control target key start
LH: loop header
LB: loop body
LE: loop exit
PB: predicated region body
PF: predicated region fallthrough
CT: control target
= control target key end

     0   :  { %s1168_s18 = smov 0   ;;  %s1170_s19 = smov 0   ;;  %s1379_s0 = inlined_call_operand.vmem [shape: f32[4,2,8,128], index: 0, kind: input, shape index: {}]   ;;  %s1380_s1 = inlined_call_operand.vmem [shape: f32[4,2,8,128], index: 1, kind: input, shape index: {}]   ;;  %s1381_s2 = inlined_call_operand.vmem [shape: f32[4,8,8,128], index: 2, kind: input, shape index: {}]   ;;  %s1382_s3 = inlined_call_operand.vmem [shape: f32[4,8,8,128], index: 3, kind: input, shape index: {}]   ;;  %s1383_s4 = inlined_call_operand.vmem [shape: f32[4,2,8,128], index: 4, kind: output, shape index: {0}]   ;;  %s1384_s5 = inlined_call_operand.vmem [shape: f32[4,2,8,128], index: 5, kind: output, shape index: {1}]  }
   0x1   :  { %s1172_s20 = smov 0  }
   0x2 LB: > { %s35_s21 = sadd.s32 1, %s1132_s19  ;;  %p988_p0 = scmp.ge.s32.totalorder %s1136_s20, 1  ;;  %s1136_s20 = sphi %s1172_s20, %s16_s20   ;;  %s1132_s19 = sphi %s1170_s19, %s1386_s19   ;;  %s1128_s18 = sphi %s1168_s18, %s1385_s18  }
   0x3   : > { %p37_p1 = scmp.ge.s32.totalorder %s35_s21, 4  ;;  %p287_p2 = scmp.lt.s32.totalorder %s1136_s20, 5 }
   0x5   : > { %s1388_s21 = smov (%p37_p1, %s35_s21), 0  ;;  %p288_p3 = pnand %p988_p0, %p287_p2 }
   0x6   : > { %p367_p4 = scmp.lt.s32.totalorder (!%p288_p3), %s1128_s18, 3 }
   0x7   : > { %291 = sbr.rel (%p288_p3) target bundleno = 65 (0x41), region = 36 }
   0xe   : > { %s1390_s18 = smov (!%p367_p4, %s1128_s18), 3 }
   0xf   : > { %s1186_s22 = sshll.u32 %s1390_s18, 4  ;;  %s1085_s23 = sshll.u32 %s1390_s18, 6 }
  0x10   : > { %s1192_s26 = scalar_lea.vmem %s1379_s0, %s1186_s22  ;;  %s1198_s29 = scalar_lea.vmem %s1380_s1, %s1186_s22 }
  0x11   : > { %s1203_s7 = scalar_lea.vmem %s1381_s2, %s1085_s23  ;;  %s1208_s10 = scalar_lea.vmem %s1382_s3, %s1085_s23  ;;  %v1001_v0 = vld [vmem:[%s1192_s26] ss:$0 sm:$0xff]  ;;  %v1005_v4 = vld [vmem:[%s1192_s26 + $0x1] ss:$0 sm:$0xff]  ;;  %v1009_v14 = vld [vmem:[%s1192_s26 + $0x2] ss:$0 sm:$0xff] }
  0x12   : > { %v1002_v1 = vld [vmem:[%s1198_s29] ss:$0 sm:$0xff]  ;;  %v1222_v7 = vld [vmem:[%s1203_s7 + $0x8] sm:$0xff]  ;;  %v1006_v11 = vld [vmem:[%s1198_s29 + $0x1] ss:$0 sm:$0xff]  ;;  %s1344_s13 = scalar_lea.vmem %s1383_s4, %s1186_s22  ;;  %s1350_s16 = scalar_lea.vmem %s1384_s5, %s1186_s22 }
  0x13   : > { %v1213_v2 = vld [vmem:[%s1203_s7] sm:$0xff]  ;;  %v1225_v8 = vld [vmem:[%s1208_s10 + $0x8] sm:$0xff]  ;;  %v471_v12 = vmul.f32 %v1005_v4, %v1222_v7  ;;  %v1234_v15 = vld [vmem:[%s1203_s7 + $0x10] sm:$0xff]  ;;  %v481_v20 = vmul.f32 %v1006_v11, %v1222_v7 }
  0x14   : > { %v1216_v3 = vld [vmem:[%s1208_s10] sm:$0xff]  ;;  %v449_v5 = vmul.f32 %v1001_v0, %v1213_v2  ;;  %v459_v10 = vmul.f32 %v1002_v1, %v1213_v2  ;;  %v479_v13 = vmul.f32 %v1005_v4, %v1225_v8  ;;  %v1237_v16 = vld [vmem:[%s1208_s10 + $0x10] sm:$0xff]  ;;  %v477_v18 = vmul.f32 %v1006_v11, %v1225_v8  ;;  %v1245_v25 = vld [vmem:[%s1203_s7 + $0x18] sm:$0xff] }
  0x15   : > { %v455_v6 = vmul.f32 %v1002_v1, %v1216_v3  ;;  %v457_v9 = vmul.f32 %v1001_v0, %v1216_v3  ;;  %v1010_v21 = vld [vmem:[%s1198_s29 + $0x2] ss:$0 sm:$0xff]  ;;  %v493_v23 = vmul.f32 %v1009_v14, %v1234_v15  ;;  %v1013_v24 = vld [vmem:[%s1192_s26 + $0x3] ss:$0 sm:$0xff]  ;;  %v1248_v26 = vld [vmem:[%s1208_s10 + $0x18] sm:$0xff]  ;;  %v501_v28 = vmul.f32 %v1009_v14, %v1237_v16 }
  0x16   : > { %v499_v30 = vmul.f32 %v1010_v21, %v1237_v16  ;;  %v1014_v31 = vld [vmem:[%s1198_s29 + $0x3] ss:$0 sm:$0xff]  ;;  %v503_v33 = vmul.f32 %v1010_v21, %v1234_v15  ;;  %v1035_v34 = vld [vmem:[%s1192_s26 + $0x8] ss:$0 sm:$0xff]  ;;  %v515_v35 = vmul.f32 %v1013_v24, %v1245_v25  ;;  %v523_v36 = vmul.f32 %v1013_v24, %v1248_v26  ;;  %v1041_v38 = vld [vmem:[%s1192_s26 + $0x9] ss:$0 sm:$0xff] }
  0x17   : > { %v456_v17 = vsub.f32 %v449_v5, %v455_v6  ;;  %v460_v19 = vadd.f32 %v459_v10, %v457_v9  ;;  %v1036_v37 = vld [vmem:[%s1198_s29 + $0x8] ss:$0 sm:$0xff]  ;;  %v1017_v40 = vld [vmem:[%s1192_s26 + $0x4] ss:$0 sm:$0xff]  ;;  %v631_v44 = vmul.f32 %v1035_v34, %v1213_v2  ;;  %v521_v46 = vmul.f32 %v1014_v31, %v1248_v26  ;;  %v1042_v49 = vld [vmem:[%s1198_s29 + $0x9] ss:$0 sm:$0xff] }
  0x18   : > { %v1261_v41 = vld [vmem:[%s1203_s7 + $0x20] sm:$0xff]  ;;  %v637_v45 = vmul.f32 %v1036_v37, %v1216_v3  ;;  %v525_v48 = vmul.f32 %v1014_v31, %v1245_v25  ;;  %v1274_v52 = vld [vmem:[%s1203_s7 + $0x28] sm:$0xff]  ;;  %v651_v54 = vmul.f32 %v1041_v38, %v1222_v7  ;;  %v657_v62 = vmul.f32 %v1042_v49, %v1225_v8 }
  0x19   : > { %v472_v22 = vadd.f32 %v471_v12, %v456_v17  ;;  %v480_v27 = vadd.f32 %v479_v13, %v460_v19  ;;  %v1264_v42 = vld [vmem:[%s1208_s10 + $0x20] sm:$0xff]  ;;  %v1047_v55 = vld [vmem:[%s1192_s26 + $0xa] ss:$0 sm:$0xff]  ;;  %v537_v56 = vmul.f32 %v1017_v40, %v1261_v41  ;;  %v1053_v12 = vld [vmem:[%s1192_s26 + $0xb] ss:$0 sm:$0xff]  ;;  %v639_v13 = vmul.f32 %v1035_v34, %v1216_v3 }
  0x1a   : > { %v1018_v47 = vld [vmem:[%s1198_s29 + $0x4] ss:$0 sm:$0xff]  ;;  %v1021_v51 = vld [vmem:[%s1192_s26 + $0x5] ss:$0 sm:$0xff]  ;;  %v545_v57 = vmul.f32 %v1017_v40, %v1264_v42  ;;  %v1281_v59 = vld [vmem:[%s1208_s10 + $0x28] sm:$0xff]  ;;  %v638_v61 = vsub.f32 %v631_v44, %v637_v45  ;;  %v671_v5 = vmul.f32 %v1047_v55, %v1234_v15  ;;  %v641_v19 = vmul.f32 %v1036_v37, %v1213_v2 }
  0x1b   : > { %v478_v29 = vsub.f32 %v472_v22, %v477_v18  ;;  %v482_v32 = vadd.f32 %v481_v20, %v480_v27  ;;  %v1048_v63 = vld [vmem:[%s1198_s29 + $0xa] ss:$0 sm:$0xff]  ;;  %v543_v0 = vmul.f32 %v1018_v47, %v1264_v42  ;;  %v559_v1 = vmul.f32 %v1021_v51, %v1274_v52  ;;  %v1022_v9 = vld [vmem:[%s1198_s29 + $0x5] ss:$0 sm:$0xff]  ;;  %v1025_v14 = vld [vmem:[%s1192_s26 + $0x6] ss:$0 sm:$0xff] }
  0x1c   : > { %v547_v4 = vmul.f32 %v1018_v47, %v1261_v41  ;;  %v652_v11 = vadd.f32 %v651_v54, %v638_v61  ;;  %v567_v17 = vmul.f32 %v1021_v51, %v1281_v59  ;;  %v677_v18 = vmul.f32 %v1048_v63, %v1237_v16  ;;  %v1298_v22 = vld [vmem:[%s1203_s7 + $0x30] sm:$0xff]  ;;  %v1054_v3 = vld [vmem:[%s1198_s29 + $0xb] ss:$0 sm:$0xff]  ;;  %v1026_v31 = vld [vmem:[%s1198_s29 + $0x6] ss:$0 sm:$0xff] }
  0x1d   : > { %v494_v39 = vadd.f32 %v493_v23, %v478_v29  ;;  %v502_v43 = vadd.f32 %v501_v28, %v482_v32  ;;  %v659_v20 = vmul.f32 %v1041_v38, %v1225_v8  ;;  %v1301_v23 = vld [vmem:[%s1208_s10 + $0x30] sm:$0xff]  ;;  %v565_v28 = vmul.f32 %v1022_v9, %v1281_v59  ;;  %v1059_v34 = vld [vmem:[%s1192_s26 + $0xc] ss:$0 sm:$0xff]  ;;  %v1029_v37 = vld [vmem:[%s1192_s26 + $0x7] ss:$0 sm:$0xff] }
  0x1e   : > { %v658_v27 = vsub.f32 %v652_v11, %v657_v62  ;;  %v569_v29 = vmul.f32 %v1022_v9, %v1274_v52  ;;  %v691_v2 = vmul.f32 %v1053_v12, %v1245_v25  ;;  %v589_v38 = vmul.f32 %v1025_v14, %v1301_v23  ;;  %v1319_v44 = vld [vmem:[%s1208_s10 + $0x38] sm:$0xff]  ;;  %v1060_v47 = vld [vmem:[%s1198_s29 + $0xc] ss:$0 sm:$0xff]  ;;  %v1030_v54 = vld [vmem:[%s1198_s29 + $0x7] ss:$0 sm:$0xff] }
  0x1f   : > { %v500_v50 = vsub.f32 %v494_v39, %v499_v30  ;;  %v504_v53 = vadd.f32 %v503_v33, %v502_v43  ;;  %v661_v30 = vmul.f32 %v1042_v49, %v1222_v7  ;;  %v697_v39 = vmul.f32 %v1054_v3, %v1248_v26  ;;  %v1316_v7 = vld [vmem:[%s1203_s7 + $0x38] sm:$0xff] }
  0x20   : > { %v672_v33 = vadd.f32 %v671_v5, %v658_v27  ;;  %v679_v40 = vmul.f32 %v1047_v55, %v1237_v16  ;;  %v587_v49 = vmul.f32 %v1026_v31, %v1301_v23  ;;  %v711_v51 = vmul.f32 %v1059_v34, %v1261_v41 }
  0x21   : > { %v516_v58 = vadd.f32 %v515_v35, %v500_v50  ;;  %v524_v60 = vadd.f32 %v523_v36, %v504_v53  ;;  %v642_v35 = vadd.f32 %v641_v19, %v639_v13  ;;  %v581_v36 = vmul.f32 %v1025_v14, %v1298_v22 }
  0x22   : > { %v591_v50 = vmul.f32 %v1026_v31, %v1298_v22  ;;  %v681_v53 = vmul.f32 %v1048_v63, %v1234_v15  ;;  %v611_v61 = vmul.f32 %v1029_v37, %v1319_v44  ;;  %v717_v62 = vmul.f32 %v1060_v47, %v1264_v42 }
  0x23   : > { %v522_v6 = vsub.f32 %v516_v58, %v521_v46  ;;  %v526_v10 = vadd.f32 %v525_v48, %v524_v60  ;;  %v678_v46 = vsub.f32 %v672_v33, %v677_v18  ;;  %v660_v48 = vadd.f32 %v659_v20, %v642_v35  ;;  %v1078_v35 = vld [vmem:[%s1198_s29 + $0xf] ss:$0 sm:$0xff] }
  0x24   : > { %v603_v60 = vmul.f32 %v1029_v37, %v1316_v7  ;;  %v609_v63 = vmul.f32 %v1030_v54, %v1319_v44  ;;  %v613_v9 = vmul.f32 %v1030_v54, %v1316_v7  ;;  %v701_v11 = vmul.f32 %v1054_v3, %v1245_v25  ;;  %v1072_v25 = vld [vmem:[%s1198_s29 + $0xe] ss:$0 sm:$0xff] }
  0x25   : > { %v538_v21 = vadd.f32 %v537_v56, %v522_v6  ;;  %v546_v24 = vadd.f32 %v545_v57, %v526_v10  ;;  %v692_v56 = vadd.f32 %v691_v2, %v678_v46  ;;  %v1065_v57 = vld [vmem:[%s1192_s26 + $0xd] ss:$0 sm:$0xff]  ;;  %v662_v58 = vadd.f32 %v661_v30, %v660_v48 }
  0x26   : > { %v1066_v6 = vld [vmem:[%s1198_s29 + $0xd] ss:$0 sm:$0xff]  ;;  %v731_v10 = vmul.f32 %v1065_v57, %v1274_v52  ;;  %v719_v19 = vmul.f32 %v1059_v34, %v1264_v42  ;;  %v721_v3 = vmul.f32 %v1060_v47, %v1261_v41  ;;  %v739_v34 = vmul.f32 %v1065_v57, %v1281_v59 }
  0x27   : > { %v544_v8 = vsub.f32 %v538_v21, %v543_v0  ;;  %v548_v32 = vadd.f32 %v547_v4, %v546_v24  ;;  %v699_v0 = vmul.f32 %v1053_v12, %v1248_v26  ;;  %v698_v5 = vsub.f32 %v692_v56, %v697_v39  ;;  %v1071_v26 = vld [vmem:[%s1192_s26 + $0xe] ss:$0 sm:$0xff] }
  0x28   : > { %v680_v15 = vadd.f32 %v679_v40, %v662_v58  ;;  %v737_v18 = vmul.f32 %v1066_v6, %v1281_v59  ;;  %v751_v42 = vmul.f32 %v1071_v26, %v1298_v22  ;;  %v741_v41 = vmul.f32 %v1066_v6, %v1274_v52 }
  0x29   : > { %v560_v43 = vadd.f32 %v559_v1, %v544_v8  ;;  %v568_v45 = vadd.f32 %v567_v17, %v548_v32  ;;  %v712_v17 = vadd.f32 %v711_v51, %v698_v5  ;;  %v1077_v8 = vld [vmem:[%s1192_s26 + $0xf] ss:$0 sm:$0xff]  ;;  %v757_v32 = vmul.f32 %v1072_v25, %v1301_v23 }
  0x2a   : > { %v682_v12 = vadd.f32 %v681_v53, %v680_v15  ;;  %v771_v37 = vmul.f32 %v1077_v8, %v1316_v7  ;;  %v777_v40 = vmul.f32 %v1078_v35, %v1319_v44  ;;  %v761_v48 = vmul.f32 %v1072_v25, %v1298_v22 }
  0x2b   : > { %v566_v16 = vsub.f32 %v560_v43, %v565_v28  ;;  %v570_v55 = vadd.f32 %v569_v29, %v568_v45  ;;  %v718_v24 = vsub.f32 %v712_v17, %v717_v62  ;;  %v759_v45 = vmul.f32 %v1071_v26, %v1301_v23 }
  0x2c   : > { %v700_v27 = vadd.f32 %v699_v0, %v682_v12  ;;  %v781_v53 = vmul.f32 %v1078_v35, %v1316_v7 }
  0x2d   : > { %v582_v1 = vadd.f32 %v581_v36, %v566_v16  ;;  %v590_v4 = vadd.f32 %v589_v38, %v570_v55  ;;  %v732_v2 = vadd.f32 %v731_v10, %v718_v24 }
  0x2e   : > { %v702_v30 = vadd.f32 %v701_v11, %v700_v27 }
  0x2f   : > { %v588_v13 = vsub.f32 %v582_v1, %v587_v49  ;;  %v592_v14 = vadd.f32 %v591_v50, %v590_v4  ;;  %v738_v31 = vsub.f32 %v732_v2, %v737_v18  ;;  %v779_v50 = vmul.f32 %v1077_v8, %v1319_v44 }
  0x30   : > { %v720_v33 = vadd.f32 %v719_v19, %v702_v30 }
  0x31   : > { %v604_v20 = vadd.f32 %v603_v60, %v588_v13  ;;  %v612_v21 = vadd.f32 %v611_v61, %v592_v14  ;;  %v752_v36 = vadd.f32 %v751_v42, %v738_v31 }
  0x32   : > { %v722_v38 = vadd.f32 %v721_v3, %v720_v33 }
  0x33   : > { %v610_v28 = vsub.f32 %v604_v20, %v609_v63  ;;  %v614_v29 = vadd.f32 %v613_v9, %v612_v21  ;;  %v758_v39 = vsub.f32 %v752_v36, %v757_v32 }
  0x34   : > { %v740_v43 = vadd.f32 %v739_v34, %v722_v38 }
  0x35   : > { %615 = vst [vmem:[%s1344_s13] sm:$0xff] %v610_v28  ;;  %616 = vst [vmem:[%s1350_s16] sm:$0xff] %v614_v29  ;;  %v772_v46 = vadd.f32 %v771_v37, %v758_v39 }
  0x36   : > { %v742_v47 = vadd.f32 %v741_v41, %v740_v43 }
  0x37   : > { %v778_v59 = vsub.f32 %v772_v46, %v777_v40 }
  0x38   : > { %v760_v49 = vadd.f32 %v759_v45, %v742_v47 }
  0x39   : > { %1079 = vst [vmem:[%s1344_s13 + $0x8] sm:$0xff] %v778_v59 }
  0x3a   : > { %v762_v51 = vadd.f32 %v761_v48, %v760_v49 }
  0x3c   : > { %v780_v52 = vadd.f32 %v779_v50, %v762_v51 }
  0x3e   : > { %v782_v16 = vadd.f32 %v781_v53, %v780_v52 }
  0x40   : > { %1080 = vst [vmem:[%s1350_s16 + $0x8] sm:$0xff] %v782_v16 }
  0x41 PF: > { %s16_s20 = sadd.s32 1, %s1136_s20   ;;  %s1385_s18 = smov %s1132_s19 }
  0x42   : > { %p13_p5 = scmp.ge.s32.totalorder %s16_s20, 6   ;;  %s1386_s19 = smov %s1388_s21 }
  0x44   :  { %15 = sbr.rel (!%p13_p5) target bundleno = 2 (0x2), region = 109 }

// kernel: reverse.6
= control target key start
LH: loop header
LB: loop body
LE: loop exit
PB: predicated region body
PF: predicated region fallthrough
CT: control target
= control target key end

     0   :  { %s584_s0 = inlined_call_operand.vmem [shape: f32[8,2,8,8,3], index: 0, kind: input, shape index: {}]   ;;  %s585_s1 = inlined_call_operand.vmem [shape: f32[8,2,8,8,3], index: 1, kind: output, shape index: {}]  }
   0x1   :  { %v192_v0 = vld [vmem:[%s584_s0 + $0x10] sm:$0xff]  ;;  %v193_v1 = vld [vmem:[%s584_s0 + $0x40] sm:$0xff]  ;;  %v207_v8 = vld [vmem:[%s584_s0 + $0x28] sm:$0xff] }
   0x2   :  { %v195_v2 = vld [vmem:[%s584_s0 + $0x70] sm:$0xff]  ;;  %4 = vst [vmem:[%s585_s1] sm:$0xff] %v192_v0  ;;  %194 = vst [vmem:[%s585_s1 + $0x30] sm:$0xff] %v193_v1  ;;  %v197_v3 = vld [vmem:[%s584_s0 + $0xa0] sm:$0xff] }
   0x3   :  { %196 = vst [vmem:[%s585_s1 + $0x60] sm:$0xff] %v195_v2  ;;  %v199_v4 = vld [vmem:[%s584_s0 + $0xd0] sm:$0xff]  ;;  %v201_v5 = vld [vmem:[%s584_s0 + $0x100] sm:$0xff]  ;;  %198 = vst [vmem:[%s585_s1 + $0x90] sm:$0xff] %v197_v3 }
   0x4   :  { %200 = vst [vmem:[%s585_s1 + $0xc0] sm:$0xff] %v199_v4  ;;  %202 = vst [vmem:[%s585_s1 + $0xf0] sm:$0xff] %v201_v5  ;;  %v203_v6 = vld [vmem:[%s584_s0 + $0x130] sm:$0xff]  ;;  %v205_v7 = vld [vmem:[%s584_s0 + $0x160] sm:$0xff] }
   0x5   :  { %204 = vst [vmem:[%s585_s1 + $0x120] sm:$0xff] %v203_v6  ;;  %206 = vst [vmem:[%s585_s1 + $0x150] sm:$0xff] %v205_v7  ;;  %v209_v9 = vld [vmem:[%s584_s0 + $0x58] sm:$0xff]  ;;  %v211_v10 = vld [vmem:[%s584_s0 + $0x88] sm:$0xff] }
   0x6   :  { %208 = vst [vmem:[%s585_s1 + $0x18] sm:$0xff] %v207_v8  ;;  %v213_v11 = vld [vmem:[%s584_s0 + $0xb8] sm:$0xff]  ;;  %210 = vst [vmem:[%s585_s1 + $0x48] sm:$0xff] %v209_v9  ;;  %v215_v12 = vld [vmem:[%s584_s0 + $0xe8] sm:$0xff] }
   0x7   :  { %212 = vst [vmem:[%s585_s1 + $0x78] sm:$0xff] %v211_v10  ;;  %214 = vst [vmem:[%s585_s1 + $0xa8] sm:$0xff] %v213_v11  ;;  %v217_v13 = vld [vmem:[%s584_s0 + $0x118] sm:$0xff]  ;;  %v219_v14 = vld [vmem:[%s584_s0 + $0x148] sm:$0xff] }
   0x8   :  { %216 = vst [vmem:[%s585_s1 + $0xd8] sm:$0xff] %v215_v12  ;;  %218 = vst [vmem:[%s585_s1 + $0x108] sm:$0xff] %v217_v13  ;;  %v221_v15 = vld [vmem:[%s584_s0 + $0x178] sm:$0xff]  ;;  %v223_v16 = vld [vmem:[%s584_s0 + $0x8] sm:$0xff] }
   0x9   :  { %220 = vst [vmem:[%s585_s1 + $0x138] sm:$0xff] %v219_v14  ;;  %v225_v17 = vld [vmem:[%s584_s0 + $0x38] sm:$0xff]  ;;  %222 = vst [vmem:[%s585_s1 + $0x168] sm:$0xff] %v221_v15  ;;  %v227_v18 = vld [vmem:[%s584_s0 + $0x68] sm:$0xff] }
   0xa   :  { %224 = vst [vmem:[%s585_s1 + $0x8] sm:$0xff] %v223_v16  ;;  %226 = vst [vmem:[%s585_s1 + $0x38] sm:$0xff] %v225_v17  ;;  %v229_v19 = vld [vmem:[%s584_s0 + $0x98] sm:$0xff]  ;;  %v231_v20 = vld [vmem:[%s584_s0 + $0xc8] sm:$0xff] }
   0xb   :  { %228 = vst [vmem:[%s585_s1 + $0x68] sm:$0xff] %v227_v18  ;;  %230 = vst [vmem:[%s585_s1 + $0x98] sm:$0xff] %v229_v19  ;;  %v233_v21 = vld [vmem:[%s584_s0 + $0xf8] sm:$0xff]  ;;  %v235_v22 = vld [vmem:[%s584_s0 + $0x128] sm:$0xff] }
   0xc   :  { %232 = vst [vmem:[%s585_s1 + $0xc8] sm:$0xff] %v231_v20  ;;  %v237_v23 = vld [vmem:[%s584_s0 + $0x158] sm:$0xff]  ;;  %234 = vst [vmem:[%s585_s1 + $0xf8] sm:$0xff] %v233_v21  ;;  %v239_v24 = vld [vmem:[%s584_s0 + $0x20] sm:$0xff] }
   0xd   :  { %236 = vst [vmem:[%s585_s1 + $0x128] sm:$0xff] %v235_v22  ;;  %238 = vst [vmem:[%s585_s1 + $0x158] sm:$0xff] %v237_v23  ;;  %v241_v25 = vld [vmem:[%s584_s0 + $0x50] sm:$0xff]  ;;  %v243_v26 = vld [vmem:[%s584_s0 + $0x80] sm:$0xff] }
   0xe   :  { %240 = vst [vmem:[%s585_s1 + $0x20] sm:$0xff] %v239_v24  ;;  %242 = vst [vmem:[%s585_s1 + $0x50] sm:$0xff] %v241_v25  ;;  %v245_v27 = vld [vmem:[%s584_s0 + $0xb0] sm:$0xff]  ;;  %v247_v28 = vld [vmem:[%s584_s0 + $0xe0] sm:$0xff] }
   0xf   :  { %244 = vst [vmem:[%s585_s1 + $0x80] sm:$0xff] %v243_v26  ;;  %v249_v29 = vld [vmem:[%s584_s0 + $0x110] sm:$0xff]  ;;  %246 = vst [vmem:[%s585_s1 + $0xb0] sm:$0xff] %v245_v27  ;;  %v251_v30 = vld [vmem:[%s584_s0 + $0x140] sm:$0xff] }
  0x10   :  { %248 = vst [vmem:[%s585_s1 + $0xe0] sm:$0xff] %v247_v28  ;;  %250 = vst [vmem:[%s585_s1 + $0x110] sm:$0xff] %v249_v29  ;;  %v253_v31 = vld [vmem:[%s584_s0 + $0x170] sm:$0xff]  ;;  %v129_v32 = vld [vmem:[%s584_s0] sm:$0xff] }
  0x11   :  { %252 = vst [vmem:[%s585_s1 + $0x140] sm:$0xff] %v251_v30  ;;  %254 = vst [vmem:[%s585_s1 + $0x170] sm:$0xff] %v253_v31  ;;  %v256_v33 = vld [vmem:[%s584_s0 + $0x30] sm:$0xff]  ;;  %v258_v34 = vld [vmem:[%s584_s0 + $0x60] sm:$0xff] }
  0x12   :  { %255 = vst [vmem:[%s585_s1 + $0x10] sm:$0xff] %v129_v32  ;;  %v260_v35 = vld [vmem:[%s584_s0 + $0x90] sm:$0xff]  ;;  %257 = vst [vmem:[%s585_s1 + $0x40] sm:$0xff] %v256_v33  ;;  %v262_v36 = vld [vmem:[%s584_s0 + $0xc0] sm:$0xff] }
  0x13   :  { %259 = vst [vmem:[%s585_s1 + $0x70] sm:$0xff] %v258_v34  ;;  %261 = vst [vmem:[%s585_s1 + $0xa0] sm:$0xff] %v260_v35  ;;  %v264_v37 = vld [vmem:[%s584_s0 + $0xf0] sm:$0xff]  ;;  %v266_v38 = vld [vmem:[%s584_s0 + $0x120] sm:$0xff] }
  0x14   :  { %263 = vst [vmem:[%s585_s1 + $0xd0] sm:$0xff] %v262_v36  ;;  %265 = vst [vmem:[%s585_s1 + $0x100] sm:$0xff] %v264_v37  ;;  %v268_v39 = vld [vmem:[%s584_s0 + $0x150] sm:$0xff]  ;;  %v270_v40 = vld [vmem:[%s584_s0 + $0x18] sm:$0xff] }
  0x15   :  { %267 = vst [vmem:[%s585_s1 + $0x130] sm:$0xff] %v266_v38  ;;  %v272_v41 = vld [vmem:[%s584_s0 + $0x48] sm:$0xff]  ;;  %269 = vst [vmem:[%s585_s1 + $0x160] sm:$0xff] %v268_v39  ;;  %v274_v42 = vld [vmem:[%s584_s0 + $0x78] sm:$0xff] }
  0x16   :  { %271 = vst [vmem:[%s585_s1 + $0x28] sm:$0xff] %v270_v40  ;;  %273 = vst [vmem:[%s585_s1 + $0x58] sm:$0xff] %v272_v41  ;;  %v276_v43 = vld [vmem:[%s584_s0 + $0xa8] sm:$0xff]  ;;  %v278_v44 = vld [vmem:[%s584_s0 + $0xd8] sm:$0xff] }
  0x17   :  { %275 = vst [vmem:[%s585_s1 + $0x88] sm:$0xff] %v274_v42  ;;  %277 = vst [vmem:[%s585_s1 + $0xb8] sm:$0xff] %v276_v43  ;;  %v280_v45 = vld [vmem:[%s584_s0 + $0x108] sm:$0xff]  ;;  %v282_v46 = vld [vmem:[%s584_s0 + $0x138] sm:$0xff] }
  0x18   :  { %279 = vst [vmem:[%s585_s1 + $0xe8] sm:$0xff] %v278_v44  ;;  %v284_v47 = vld [vmem:[%s584_s0 + $0x168] sm:$0xff]  ;;  %281 = vst [vmem:[%s585_s1 + $0x118] sm:$0xff] %v280_v45 }
  0x19   :  { %283 = vst [vmem:[%s585_s1 + $0x148] sm:$0xff] %v282_v46  ;;  %285 = vst [vmem:[%s585_s1 + $0x178] sm:$0xff] %v284_v47 }

// kernel: _lambda_.10
= control target key start
LH: loop header
LB: loop body
LE: loop exit
PB: predicated region body
PF: predicated region fallthrough
CT: control target
= control target key end

     0   :  { %s524_s15 = smov 0   ;;  %s555_s0 = inlined_call_operand.vmem [shape: f32[8,1024], index: 0, kind: input, shape index: {}]   ;;  %s556_s1 = inlined_call_operand.vmem [shape: f32[8,8], index: 1, kind: input, shape index: {}]   ;;  %s557_s2 = inlined_call_operand.vmem [shape: f32[8,1], index: 2, kind: input, shape index: {}]   ;;  %s558_s3 = inlined_call_operand.vmem [shape: f32[8,1024], index: 3, kind: input, shape index: {}]   ;;  %s559_s4 = inlined_call_operand.vmem [shape: f32[8,1024], index: 4, kind: output, shape index: {}]  }
   0x1 LB: > { %s455_s16 = sadd.s32 4294967295, %s496_s15   ;;  %p459_p0 = scmp.ge.s32.totalorder %s496_s15, 1  ;;  %s496_s15 = sphi %s524_s15, %s14_s15  }
   0x2   : > { %p174_p1 = scmp.lt.s32.totalorder %s496_s15, 3 }
   0x4   : > { %p175_p2 = pnand %p459_p0, %p174_p1 }
   0x5   : > { %s460_s17 = sshll.u32 (!%p175_p2), %s455_s16, 2  ;;  %v234_v0 = vld [vmem:[%s557_s2] sm:$0xff] (!%p175_p2)  ;;  %v498_v1 = vmov (!%p175_p2), 0   ;;  %vm244_vm0 = vcmask (!%p175_p2), 1043456   ;;  %vm240_vm1 = vcmask (!%p175_p2), 64512  }
   0x6   : > { %178 = sbr.rel (%p175_p2) target bundleno = 268 (0x10c), region = 36  ;;  %p206_p3 = scmp.lt.s32.totalorder (!%p175_p2), %s460_s17, 7  ;;  %289 = vmatprep.mubr.bf16.mxu0 (!%p175_p2), %v498_v1  ;;  %330 = vmatprep.mubr.bf16.mxu1 (!%p175_p2), %v498_v1  ;;  %v224_v2 = vld [vmem:[%s556_s1] sm:$0xff] (!%p175_p2) }
   0x7   : > { %481 = vset.pattern.permute.xlu0 (!%p175_p2), %v498_v1  ;;  %v225_v12 = vpack.c.bf16 (!%p175_p2), %v224_v2, %v224_v2 }
   0x8   : > { %237 = vperm.xlu0 (!%p175_p2), %481, %v234_v0  }
   0xd   : > { %s561_s17 = smov (!%p206_p3, %s460_s17), 7 }
   0xe   : > { %s535_s20 = sshll.u32 %s561_s17, 3 }
   0xf   : > { %s209_s23 = scalar_lea.vmem %s555_s0, %s535_s20  ;;  %s215_s28 = scalar_lea.vmem %s558_s3, %s535_s20 }
  0x10   : > { %v227_v3 = vld [vmem:[%s209_s23 + $0x8] sm:$0xff]  ;;  %v229_v4 = vld [vmem:[%s209_s23 + $0x18] sm:$0xff]  ;;  %v226_v5 = vld [vmem:[%s209_s23] sm:$0xff]  ;;  %s221_s5 = scalar_lea.vmem %s559_s4, %s535_s20 }
  0x11   : > { %v231_v6 = vpack.c.bf16 %v227_v3, %v227_v3  ;;  %v233_v7 = vpack.c.bf16 %v229_v4, %v229_v4  ;;  %v230_v8 = vpack.c.bf16 %v226_v5, %v226_v5  ;;  %v228_v9 = vld [vmem:[%s209_s23 + $0x10] sm:$0xff]  ;;  %v339_v16 = vld [vmem:[%s215_s28] sm:$0xff]  ;;  %v340_v21 = vld [vmem:[%s215_s28 + $0x8] sm:$0xff] }
  0x12   : > { %v232_v10 = vpack.c.bf16 %v228_v9, %v228_v9  ;;  %v341_v19 = vld [vmem:[%s215_s28 + $0x10] sm:$0xff]  ;;  %v342_v25 = vld [vmem:[%s215_s28 + $0x18] sm:$0xff] }
  0x13   : > { %466 = vmatprep.subr.msk.bf16.mxu0 %vm244_vm0, %v231_v6  ;;  %468 = vmatprep.subr.msk.bf16.mxu1 %vm244_vm0, %v233_v7  ;;  %v246_v11 = vsel %vm244_vm0, %v230_v8, 0 }
  0x14   : > { %258 = vmatpush1.bf16.msra.mxu0 %v246_v11  ;;  %v252_v13 = vsel %vm244_vm0, %v232_v10, 0 }
  0x15   : > { %299 = vmatpush1.bf16.msra.mxu1 %v252_v13 }
  0x17   : > { %467 = vmatmul.mubr.msk.bf16.vlgmr.msra.gmra.mrb[0].mxu0 %vm240_vm1, %v225_v12 }
  0x18   : > { %469 = vmatmul.mubr.msk.bf16.vlgmr.msra.gmra.mrb[0].mxu1 %vm240_vm1, %v225_v12 }
  0x87   : > { %v238_v14 = vpop.permute.xlu0 %237 }
  0xea   : > { %v291_v15 = vpop.f32.mrb[0].mxu0 }
  0xeb   : > { %v292_v17 = vadd.f32 %v291_v15, %v238_v14  ;;  %v332_v18 = vpop.f32.mrb[0].mxu1  ;;  %v293_v20 = vpop.f32.mrb[1].mxu0 }
  0xec   : > { %v333_v22 = vadd.f32 %v332_v18, %v238_v14  ;;  %v294_v23 = vadd.f32 %v293_v20, %v238_v14  ;;  %v334_v24 = vpop.f32.mrb[1].mxu1  ;;  %v295_v26 = vpop.f32.mrb[2].mxu0 }
  0xed   : > { %v343_v27 = vadd.f32 %v339_v16, %v292_v17  ;;  %v335_v28 = vadd.f32 %v334_v24, %v238_v14  ;;  %v336_v29 = vpop.f32.mrb[2].mxu1  ;;  %v296_v30 = vpop.f32.mrb[3].mxu0 }
  0xee   : > { %v345_v31 = vadd.f32 %v341_v19, %v333_v22  ;;  %v344_v32 = vadd.f32 %v340_v21, %v294_v23  ;;  %v337_v33 = vpop.f32.mrb[3].mxu1 }
  0xef   : > { %v351_v34 = vmul.f32 0.044715, %v343_v27  ;;  %v346_v35 = vadd.f32 %v342_v25, %v335_v28  ;;  %v347_v57 = vmul.f32 0.5, %v343_v27 }
  0xf0   : > { %v353_v36 = vmul.f32 0.044715, %v345_v31  ;;  %v352_v37 = vmul.f32 0.044715, %v344_v32  ;;  %v348_v63 = vmul.f32 0.5, %v344_v32  ;;  %v349_v1 = vmul.f32 0.5, %v345_v31 }
  0xf1   : > { %v355_v38 = vmul.f32 %v351_v34, %v343_v27  ;;  %v354_v39 = vmul.f32 0.044715, %v346_v35  ;;  %v350_v4 = vmul.f32 0.5, %v346_v35 }
  0xf2   : > { %v357_v40 = vmul.f32 %v353_v36, %v345_v31  ;;  %v356_v41 = vmul.f32 %v352_v37, %v344_v32 }
  0xf3   : > { %v359_v42 = vmul.f32 %v355_v38, %v343_v27  ;;  %v358_v43 = vmul.f32 %v354_v39, %v346_v35 }
  0xf4   : > { %v361_v44 = vmul.f32 %v357_v40, %v345_v31  ;;  %v360_v45 = vmul.f32 %v356_v41, %v344_v32 }
  0xf5   : > { %v363_v46 = vadd.f32 %v359_v42, %v343_v27  ;;  %v362_v47 = vmul.f32 %v358_v43, %v346_v35 }
  0xf6   : > { %v365_v48 = vadd.f32 %v361_v44, %v345_v31  ;;  %v364_v49 = vadd.f32 %v360_v45, %v344_v32 }
  0xf7   : > { %v367_v50 = vmul.f32 0.7978846, %v363_v46  ;;  %v366_v51 = vadd.f32 %v362_v47, %v346_v35 }
  0xf8   : > { %v369_v52 = vmul.f32 0.7978846, %v365_v48  ;;  %v368_v53 = vmul.f32 0.7978846, %v364_v49 }
  0xf9   : > { %482 = vtanh.f32 %v367_v50  ;;  %v370_v54 = vmul.f32 0.7978846, %v366_v51 }
  0xfa   : > { %484 = vtanh.f32 %v369_v52 }
  0xfb   : > { %486 = vtanh.f32 %v368_v53 }
  0xfc   : > { %488 = vtanh.f32 %v370_v54 }
 0x103   : > { %v483_v55 = vpop.eup %482 }
 0x104   : > { %v485_v56 = vpop.eup %484  ;;  %v375_v58 = vadd.f32 1.0, %v483_v55 }
 0x105   : > { %v487_v59 = vpop.eup %486  ;;  %v377_v60 = vadd.f32 1.0, %v485_v56 }
 0x106   : > { %v489_v61 = vpop.eup %488  ;;  %v379_v62 = vmul.f32 %v375_v58, %v347_v57  ;;  %v376_v0 = vadd.f32 1.0, %v487_v59 }
 0x107   : > { %v378_v2 = vadd.f32 1.0, %v489_v61  ;;  %v381_v5 = vmul.f32 %v377_v60, %v349_v1 }
 0x108   : > { %383 = vst [vmem:[%s221_s5] sm:$0xff] %v379_v62  ;;  %v380_v3 = vmul.f32 %v376_v0, %v348_v63 }
 0x109   : > { %v382_v6 = vmul.f32 %v378_v2, %v350_v4  ;;  %385 = vst [vmem:[%s221_s5 + $0x10] sm:$0xff] %v381_v5 }
 0x10a   : > { %384 = vst [vmem:[%s221_s5 + $0x8] sm:$0xff] %v380_v3 }
 0x10b   : > { %386 = vst [vmem:[%s221_s5 + $0x18] sm:$0xff] %v382_v6 }
 0x10c PF: > { %s14_s15 = sadd.s32 1, %s496_s15  }
 0x10d   : > { %p11_p4 = scmp.ge.s32.totalorder %s14_s15, 4  }
 0x10f   :  { %13 = sbr.rel (!%p11_p4) target bundleno = 1 (0x1), region = 69 }

// kernel: _lambda_.14
= control target key start
LH: loop header
LB: loop body
LE: loop exit
PB: predicated region body
PF: predicated region fallthrough
CT: control target
= control target key end

     0   :  { %s480_s15 = smov 0   ;;  %s511_s0 = inlined_call_operand.vmem [shape: f32[8,1024], index: 0, kind: input, shape index: {}]   ;;  %s512_s1 = inlined_call_operand.vmem [shape: f32[8,8], index: 1, kind: input, shape index: {}]   ;;  %s513_s2 = inlined_call_operand.vmem [shape: f32[8,1], index: 2, kind: input, shape index: {}]   ;;  %s514_s3 = inlined_call_operand.vmem [shape: f32[8,1024], index: 3, kind: input, shape index: {}]   ;;  %s515_s4 = inlined_call_operand.vmem [shape: f32[8,1024], index: 4, kind: output, shape index: {}]  }
   0x1 LB: > { %s419_s16 = sadd.s32 4294967295, %s452_s15   ;;  %p423_p0 = scmp.ge.s32.totalorder %s452_s15, 1  ;;  %s452_s15 = sphi %s480_s15, %s14_s15  }
   0x2   : > { %p174_p1 = scmp.lt.s32.totalorder %s452_s15, 3 }
   0x4   : > { %p175_p2 = pnand %p423_p0, %p174_p1 }
   0x5   : > { %s424_s17 = sshll.u32 (!%p175_p2), %s419_s16, 2  ;;  %v234_v0 = vld [vmem:[%s513_s2] sm:$0xff] (!%p175_p2)  ;;  %v454_v1 = vmov (!%p175_p2), 0   ;;  %vm244_vm0 = vcmask (!%p175_p2), 1043456   ;;  %vm240_vm1 = vcmask (!%p175_p2), 64512  }
   0x6   : > { %178 = sbr.rel (%p175_p2) target bundleno = 242 (0xf2), region = 36  ;;  %p206_p3 = scmp.lt.s32.totalorder (!%p175_p2), %s424_s17, 7  ;;  %289 = vmatprep.mubr.bf16.mxu0 (!%p175_p2), %v454_v1  ;;  %330 = vmatprep.mubr.bf16.mxu1 (!%p175_p2), %v454_v1  ;;  %v224_v2 = vld [vmem:[%s512_s1] sm:$0xff] (!%p175_p2) }
   0x7   : > { %445 = vset.pattern.permute.xlu0 (!%p175_p2), %v454_v1  ;;  %v225_v12 = vpack.c.bf16 (!%p175_p2), %v224_v2, %v224_v2 }
   0x8   : > { %237 = vperm.xlu0 (!%p175_p2), %445, %v234_v0  }
   0xd   : > { %s517_s17 = smov (!%p206_p3, %s424_s17), 7 }
   0xe   : > { %s491_s20 = sshll.u32 %s517_s17, 3 }
   0xf   : > { %s209_s23 = scalar_lea.vmem %s511_s0, %s491_s20  ;;  %s215_s28 = scalar_lea.vmem %s514_s3, %s491_s20 }
  0x10   : > { %v227_v3 = vld [vmem:[%s209_s23 + $0x8] sm:$0xff]  ;;  %v229_v4 = vld [vmem:[%s209_s23 + $0x18] sm:$0xff]  ;;  %v226_v5 = vld [vmem:[%s209_s23] sm:$0xff]  ;;  %s221_s5 = scalar_lea.vmem %s515_s4, %s491_s20 }
  0x11   : > { %v231_v6 = vpack.c.bf16 %v227_v3, %v227_v3  ;;  %v233_v7 = vpack.c.bf16 %v229_v4, %v229_v4  ;;  %v230_v8 = vpack.c.bf16 %v226_v5, %v226_v5  ;;  %v228_v9 = vld [vmem:[%s209_s23 + $0x10] sm:$0xff]  ;;  %v339_v16 = vld [vmem:[%s215_s28] sm:$0xff]  ;;  %v340_v21 = vld [vmem:[%s215_s28 + $0x8] sm:$0xff] }
  0x12   : > { %v232_v10 = vpack.c.bf16 %v228_v9, %v228_v9  ;;  %v341_v19 = vld [vmem:[%s215_s28 + $0x10] sm:$0xff]  ;;  %v342_v25 = vld [vmem:[%s215_s28 + $0x18] sm:$0xff] }
  0x13   : > { %430 = vmatprep.subr.msk.bf16.mxu0 %vm244_vm0, %v231_v6  ;;  %432 = vmatprep.subr.msk.bf16.mxu1 %vm244_vm0, %v233_v7  ;;  %v246_v11 = vsel %vm244_vm0, %v230_v8, 0 }
  0x14   : > { %258 = vmatpush1.bf16.msra.mxu0 %v246_v11  ;;  %v252_v13 = vsel %vm244_vm0, %v232_v10, 0 }
  0x15   : > { %299 = vmatpush1.bf16.msra.mxu1 %v252_v13 }
  0x17   : > { %431 = vmatmul.mubr.msk.bf16.vlgmr.msra.gmra.mrb[0].mxu0 %vm240_vm1, %v225_v12 }
  0x18   : > { %433 = vmatmul.mubr.msk.bf16.vlgmr.msra.gmra.mrb[0].mxu1 %vm240_vm1, %v225_v12 }
  0x87   : > { %v238_v14 = vpop.permute.xlu0 %237 }
  0xea   : > { %v291_v15 = vpop.f32.mrb[0].mxu0 }
  0xeb   : > { %v292_v17 = vadd.f32 %v291_v15, %v238_v14  ;;  %v332_v18 = vpop.f32.mrb[0].mxu1  ;;  %v293_v20 = vpop.f32.mrb[1].mxu0 }
  0xec   : > { %v333_v22 = vadd.f32 %v332_v18, %v238_v14  ;;  %v294_v23 = vadd.f32 %v293_v20, %v238_v14  ;;  %v334_v24 = vpop.f32.mrb[1].mxu1  ;;  %v295_v26 = vpop.f32.mrb[2].mxu0 }
  0xed   : > { %v343_v27 = vadd.f32 %v339_v16, %v292_v17  ;;  %v335_v28 = vadd.f32 %v334_v24, %v238_v14  ;;  %v336_v29 = vpop.f32.mrb[2].mxu1  ;;  %v296_v30 = vpop.f32.mrb[3].mxu0 }
  0xee   : > { %v345_v31 = vadd.f32 %v341_v19, %v333_v22  ;;  %v344_v32 = vadd.f32 %v340_v21, %v294_v23  ;;  %v337_v33 = vpop.f32.mrb[3].mxu1 }
  0xef   : > { %347 = vst [vmem:[%s221_s5] sm:$0xff] %v343_v27  ;;  %v346_v34 = vadd.f32 %v342_v25, %v335_v28 }
  0xf0   : > { %348 = vst [vmem:[%s221_s5 + $0x8] sm:$0xff] %v344_v32  ;;  %349 = vst [vmem:[%s221_s5 + $0x10] sm:$0xff] %v345_v31 }
  0xf1   : > { %350 = vst [vmem:[%s221_s5 + $0x18] sm:$0xff] %v346_v34 }
  0xf2 PF: > { %s14_s15 = sadd.s32 1, %s452_s15  }
  0xf3   : > { %p11_p4 = scmp.ge.s32.totalorder %s14_s15, 4  }
  0xf5   :  { %13 = sbr.rel (!%p11_p4) target bundleno = 1 (0x1), region = 69 }

// kernel: _lambda_.15
= control target key start
LH: loop header
LB: loop body
LE: loop exit
PB: predicated region body
PF: predicated region fallthrough
CT: control target
= control target key end

     0   :  { %s800_s18 = smov 0   ;;  %s979_s0 = inlined_call_operand.vmem [shape: f32[8,1024], index: 0, kind: input, shape index: {}]   ;;  %s980_s1 = inlined_call_operand.vmem [shape: f32[32,8], index: 1, kind: input, shape index: {}]   ;;  %s981_s2 = inlined_call_operand.vmem [shape: f32[32,1], index: 2, kind: input, shape index: {}]   ;;  %s982_s3 = inlined_call_operand.vmem [shape: f32[8,32], index: 3, kind: input, shape index: {}]   ;;  %s983_s4 = inlined_call_operand.vmem [shape: f32[8,1], index: 4, kind: input, shape index: {}]   ;;  %s984_s5 = inlined_call_operand.vmem [shape: f32[8,1024], index: 5, kind: output, shape index: {}]  }
   0x1 LB: > { %s699_s19 = sadd.s32 4294967295, %s767_s18   ;;  %p703_p0 = scmp.ge.s32.totalorder %s767_s18, 1  ;;  %s767_s18 = sphi %s800_s18, %s15_s18  }
   0x2   : > { %p188_p1 = scmp.lt.s32.totalorder %s767_s18, 3 }
   0x4   : > { %p189_p2 = pnand %p703_p0, %p188_p1 }
   0x5   : > { %s704_s20 = sshll.u32 (!%p189_p2), %s699_s19, 2  ;;  %v769_v0 = vmov (!%p189_p2), 0   ;;  %v243_v1 = vld [vmem:[%s981_s2] sm:$0xff] (!%p189_p2)  ;;  %v245_v2 = vld [vmem:[%s981_s2 + $0x10] sm:$0xff] (!%p189_p2)  ;;  %v244_v3 = vld [vmem:[%s981_s2 + $0x8] sm:$0xff] (!%p189_p2)  ;;  %vm274_vm0 = vcmask (!%p189_p2), 1043456  }
   0x6   : > { %192 = sbr.rel (%p189_p2) target bundleno = 507 (0x1fb), region = 40  ;;  %p217_p3 = scmp.lt.s32.totalorder (!%p189_p2), %s704_s20, 7  ;;  %319 = vmatprep.mubr.bf16.mxu0 (!%p189_p2), %v769_v0  ;;  %372 = vmatprep.mubr.bf16.mxu1 (!%p189_p2), %v769_v0  ;;  %v246_v4 = vld [vmem:[%s981_s2 + $0x18] sm:$0xff] (!%p189_p2)  ;;  %v229_v5 = vld [vmem:[%s980_s1] sm:$0xff] (!%p189_p2)  ;;  %v230_v6 = vld [vmem:[%s980_s1 + $0x8] sm:$0xff] (!%p189_p2)  ;;  %vm267_vm1 = vcmask (!%p189_p2), 64512  }
   0x7   : > { %727 = vset.pattern.permute.xlu0 (!%p189_p2), %v769_v0  ;;  %728 = vset.pattern.permute.xlu1 (!%p189_p2), %v769_v0  ;;  %v547_v14 = vld [vmem:[%s983_s4] sm:$0xff] (!%p189_p2)  ;;  %v233_v17 = vpack.c.bf16 (!%p189_p2), %v230_v6, %v229_v5  ;;  %v231_v19 = vld [vmem:[%s980_s1 + $0x10] sm:$0xff] (!%p189_p2)  ;;  %v232_v20 = vld [vmem:[%s980_s1 + $0x18] sm:$0xff] (!%p189_p2)  ;;  %vm553_vm2 = vcmask (!%p189_p2), 261120  }
   0x8   : > { %249 = vperm.xlu0 (!%p189_p2), %727, %v243_v1   ;;  %259 = vperm.xlu1 (!%p189_p2), %728, %v245_v2   ;;  %v234_v21 = vpack.c.bf16 (!%p189_p2), %v232_v20, %v231_v19 }
   0xc   : > { %254 = vperm.xlu0 (!%p189_p2), %727, %v244_v3   ;;  %264 = vperm.xlu1 (!%p189_p2), %728, %v246_v4  }
   0xd   : > { %s986_s20 = smov (!%p217_p3, %s704_s20), 7 }
   0xe   : > { %s705_s29 = sshll.u32 %s986_s20, 3 }
   0xf   : > { %s220_s7 = scalar_lea.vmem %s979_s0, %s705_s29  ;;  %s226_s24 = scalar_lea.vmem %s984_s5, %s705_s29 }
  0x10   : > { %v236_v7 = vld [vmem:[%s220_s7 + $0x8] sm:$0xff]  ;;  %v238_v8 = vld [vmem:[%s220_s7 + $0x18] sm:$0xff]  ;;  %v235_v9 = vld [vmem:[%s220_s7] sm:$0xff]  ;;  %550 = vperm.xlu0 %727, %v547_v14  }
  0x11   : > { %v240_v10 = vpack.c.bf16 %v236_v7, %v236_v7  ;;  %v242_v11 = vpack.c.bf16 %v238_v8, %v238_v8  ;;  %v239_v12 = vpack.c.bf16 %v235_v9, %v235_v9  ;;  %v237_v13 = vld [vmem:[%s220_s7 + $0x10] sm:$0xff] }
  0x12   : > { %v241_v15 = vpack.c.bf16 %v237_v13, %v237_v13 }
  0x13   : > { %708 = vmatprep.subr.msk.bf16.mxu0 %vm274_vm0, %v240_v10  ;;  %711 = vmatprep.subr.msk.bf16.mxu1 %vm274_vm0, %v242_v11  ;;  %v276_v16 = vsel %vm274_vm0, %v239_v12, 0 }
  0x14   : > { %288 = vmatpush1.bf16.msra.mxu0 %v276_v16  ;;  %v282_v18 = vsel %vm274_vm0, %v241_v15, 0 }
  0x15   : > { %341 = vmatpush1.bf16.msra.mxu1 %v282_v18 }
  0x17   : > { %709 = vmatmul.mubr.msk.bf16.vlgmr.msra.gmra.mrb[0].mxu0 %vm267_vm1, %v233_v17 }
  0x18   : > { %712 = vmatmul.mubr.msk.bf16.vlgmr.msra.gmra.mrb[0].mxu1 %vm267_vm1, %v233_v17  ;;  %329 = vmatprep.mubr.bf16.mxu0 %v769_v0 }
  0x19   : > { %382 = vmatprep.mubr.bf16.mxu1 %v769_v0 }
  0x1f   : > { %710 = vmatmul.mubr.msk.bf16.gmra.mrb[4].mxu0 %vm267_vm1, %v234_v21 }
  0x20   : > { %713 = vmatmul.mubr.msk.bf16.gmra.mrb[4].mxu1 %vm267_vm1, %v234_v21  ;;  %589 = vmatprep.mubr.bf16.mxu0 %v769_v0 }
  0x21   : > { %630 = vmatprep.mubr.bf16.mxu1 %v769_v0 }
  0x87   : > { %v250_v22 = vpop.permute.xlu0 %249  ;;  %v260_v53 = vpop.permute.xlu1 %259 }
  0x8b   : > { %v255_v23 = vpop.permute.xlu0 %254  ;;  %v265_v19 = vpop.permute.xlu1 %264 }
  0xea   : > { %v321_v24 = vpop.f32.mrb[0].mxu0 }
  0xeb   : > { %v847_v25 = vadd.f32 %v321_v24, %v250_v22  ;;  %v374_v26 = vpop.f32.mrb[0].mxu1  ;;  %v323_v27 = vpop.f32.mrb[1].mxu0 }
  0xec   : > { %v849_v28 = vadd.f32 %v374_v26, %v250_v22  ;;  %v851_v29 = vadd.f32 %v323_v27, %v250_v22  ;;  %v376_v30 = vpop.f32.mrb[1].mxu1  ;;  %v325_v31 = vpop.f32.mrb[2].mxu0 }
  0xed   : > { %v409_v32 = vmul.f32 0.044715, %v847_v25  ;;  %v854_v33 = vadd.f32 %v376_v30, %v250_v22  ;;  %v856_v34 = vadd.f32 %v325_v31, %v255_v23  ;;  %v378_v35 = vpop.f32.mrb[2].mxu1  ;;  %v327_v36 = vpop.f32.mrb[3].mxu0 }
  0xee   : > { %v411_v37 = vmul.f32 0.044715, %v849_v28  ;;  %v410_v38 = vmul.f32 0.044715, %v851_v29  ;;  %v860_v39 = vadd.f32 %v378_v35, %v255_v23  ;;  %v380_v40 = vpop.f32.mrb[3].mxu1  ;;  %v865_v44 = vadd.f32 %v327_v36, %v255_v23 }
  0xef   : > { %v425_v41 = vmul.f32 %v409_v32, %v847_v25  ;;  %v412_v42 = vmul.f32 0.044715, %v854_v33  ;;  %v413_v43 = vmul.f32 0.044715, %v856_v34  ;;  %v869_v47 = vadd.f32 %v380_v40, %v255_v23 }
  0xf0   : > { %v427_v45 = vmul.f32 %v411_v37, %v849_v28  ;;  %v415_v46 = vmul.f32 0.044715, %v860_v39  ;;  %v426_v49 = vmul.f32 %v410_v38, %v851_v29  ;;  %v414_v58 = vmul.f32 0.044715, %v865_v44 }
  0xf1   : > { %v441_v48 = vmul.f32 %v425_v41, %v847_v25  ;;  %v429_v50 = vmul.f32 %v413_v43, %v856_v34  ;;  %v428_v56 = vmul.f32 %v412_v42, %v854_v33  ;;  %v416_v63 = vmul.f32 0.044715, %v869_v47 }
  0xf2   : > { %v443_v51 = vmul.f32 %v427_v45, %v849_v28  ;;  %v431_v52 = vmul.f32 %v415_v46, %v860_v39  ;;  %v331_v54 = vpop.f32.mrb[4].mxu0  ;;  %v442_v4 = vmul.f32 %v426_v49, %v851_v29  ;;  %v430_v15 = vmul.f32 %v414_v58, %v865_v44 }
  0xf3   : > { %v457_v55 = vadd.f32 %v441_v48, %v847_v25  ;;  %v445_v57 = vmul.f32 %v429_v50, %v856_v34  ;;  %v384_v59 = vpop.f32.mrb[4].mxu1  ;;  %v333_v60 = vpop.f32.mrb[5].mxu0  ;;  %v883_v0 = vadd.f32 %v331_v54, %v260_v53  ;;  %v432_v22 = vmul.f32 %v416_v63, %v869_v47 }
  0xf4   : > { %v459_v61 = vadd.f32 %v443_v51, %v849_v28  ;;  %v447_v62 = vmul.f32 %v431_v52, %v860_v39  ;;  %v386_v1 = vpop.f32.mrb[5].mxu1  ;;  %v335_v2 = vpop.f32.mrb[6].mxu0  ;;  %v887_v6 = vadd.f32 %v384_v59, %v260_v53  ;;  %v891_v12 = vadd.f32 %v333_v60, %v260_v53 }
  0xf5   : > { %v473_v3 = vmul.f32 0.7978846, %v457_v55  ;;  %v461_v5 = vadd.f32 %v445_v57, %v856_v34  ;;  %v388_v7 = vpop.f32.mrb[6].mxu1  ;;  %v337_v8 = vpop.f32.mrb[7].mxu0  ;;  %v417_v11 = vmul.f32 0.044715, %v883_v0  ;;  %v895_v17 = vadd.f32 %v386_v1, %v260_v53 }
  0xf6   : > { %v475_v9 = vmul.f32 0.7978846, %v459_v61  ;;  %v463_v10 = vadd.f32 %v447_v62, %v860_v39  ;;  %v390_v13 = vpop.f32.mrb[7].mxu1  ;;  %v419_v16 = vmul.f32 0.044715, %v887_v6  ;;  %v901_v24 = vadd.f32 %v335_v2, %v265_v19 }
  0xf7   : > { %v477_v14 = vmul.f32 0.7978846, %v461_v5  ;;  %729 = vtanh.f32 %v473_v3  ;;  %v433_v20 = vmul.f32 %v417_v11, %v883_v0  ;;  %v418_v21 = vmul.f32 0.044715, %v891_v12 }
  0xf8   : > { %v479_v18 = vmul.f32 0.7978846, %v463_v10  ;;  %v435_v23 = vmul.f32 %v419_v16, %v887_v6  ;;  %v420_v27 = vmul.f32 0.044715, %v895_v17  ;;  %v905_v30 = vadd.f32 %v388_v7, %v265_v19 }
  0xf9   : > { %731 = vtanh.f32 %v477_v14  ;;  %v449_v26 = vmul.f32 %v433_v20, %v883_v0  ;;  %v421_v32 = vmul.f32 0.044715, %v901_v24  ;;  %v909_v35 = vadd.f32 %v337_v8, %v265_v19 }
  0xfa   : > { %733 = vtanh.f32 %v475_v9  ;;  %v451_v31 = vmul.f32 %v435_v23, %v887_v6  ;;  %v434_v37 = vmul.f32 %v418_v21, %v891_v12  ;;  %v423_v38 = vmul.f32 0.044715, %v905_v30 }
  0xfb   : > { %735 = vtanh.f32 %v479_v18  ;;  %v465_v36 = vadd.f32 %v449_v26, %v883_v0  ;;  %v914_v40 = vadd.f32 %v390_v13, %v265_v19  ;;  %v446_v41 = vmul.f32 %v430_v15, %v865_v44 }
  0xfc   : > { %v467_v42 = vadd.f32 %v451_v31, %v887_v6  ;;  %v437_v43 = vmul.f32 %v421_v32, %v901_v24  ;;  %v422_v45 = vmul.f32 0.044715, %v909_v35  ;;  %v439_v48 = vmul.f32 %v423_v38, %v905_v30 }
  0xfd   : > { %v481_v46 = vmul.f32 0.7978846, %v465_v36  ;;  %v424_v49 = vmul.f32 0.044715, %v914_v40  ;;  %v393_v50 = vmul.f32 0.5, %v847_v25  ;;  %v444_v51 = vmul.f32 %v428_v56, %v854_v33 }
  0xfe   : > { %v483_v52 = vmul.f32 0.7978846, %v467_v42  ;;  %v436_v53 = vmul.f32 %v420_v27, %v895_v17  ;;  %v453_v54 = vmul.f32 %v437_v43, %v901_v24  ;;  %v448_v55 = vmul.f32 %v432_v22, %v869_v47 }
  0xff   : > { %v450_v57 = vmul.f32 %v434_v37, %v891_v12  ;;  %v455_v58 = vmul.f32 %v439_v48, %v905_v30  ;;  %v458_v59 = vadd.f32 %v442_v4, %v851_v29  ;;  %737 = vtanh.f32 %v481_v46 }
 0x100   : > { %v469_v60 = vadd.f32 %v453_v54, %v901_v24  ;;  %v438_v25 = vmul.f32 %v422_v45, %v909_v35  ;;  %v462_v56 = vadd.f32 %v446_v41, %v865_v44  ;;  %739 = vtanh.f32 %v483_v52 }
 0x101   : > { %v730_v61 = vpop.eup %729  ;;  %v471_v62 = vadd.f32 %v455_v58, %v905_v30  ;;  %v440_v63 = vmul.f32 %v424_v49, %v914_v40  ;;  %v474_v1 = vmul.f32 0.7978846, %v458_v59  ;;  %v452_v3 = vmul.f32 %v436_v53, %v895_v17 }
 0x102   : > { %v485_v5 = vmul.f32 0.7978846, %v469_v60  ;;  %v478_v7 = vmul.f32 0.7978846, %v462_v56  ;;  %v460_v4 = vadd.f32 %v444_v51, %v854_v33  ;;  %v464_v10 = vadd.f32 %v448_v55, %v869_v47 }
 0x103   : > { %v732_v2 = vpop.eup %731  ;;  %v487_v9 = vmul.f32 0.7978846, %v471_v62  ;;  %741 = vtanh.f32 %v474_v1  ;;  %v397_v11 = vmul.f32 0.5, %v856_v34  ;;  %v505_v15 = vadd.f32 1.0, %v730_v61 }
 0x104   : > { %v734_v8 = vpop.eup %733  ;;  %743 = vtanh.f32 %v485_v5  ;;  %v476_v14 = vmul.f32 0.7978846, %v460_v4  ;;  %v509_v16 = vadd.f32 1.0, %v732_v2  ;;  %v454_v18 = vmul.f32 %v438_v25, %v909_v35 }
 0x105   : > { %v736_v13 = vpop.eup %735  ;;  %745 = vtanh.f32 %v487_v9  ;;  %v456_v19 = vmul.f32 %v440_v63, %v914_v40  ;;  %v480_v20 = vmul.f32 0.7978846, %v464_v10  ;;  %v941_v21 = vmul.f32 %v505_v15, %v393_v50 }
 0x106   : > { %747 = vtanh.f32 %v478_v7  ;;  %v943_v22 = vmul.f32 %v509_v16, %v397_v11  ;;  %v507_v23 = vadd.f32 1.0, %v734_v8  ;;  %v395_v34 = vmul.f32 0.5, %v849_v28 }
 0x107   : > { %749 = vtanh.f32 %v476_v14  ;;  %v399_v26 = vmul.f32 0.5, %v860_v39  ;;  %v511_v27 = vadd.f32 1.0, %v736_v13  ;;  %v466_v32 = vadd.f32 %v450_v57, %v891_v12 }
 0x108   : > { %751 = vtanh.f32 %v480_v20  ;;  %v539_v31 = vpack.c.bf16 %v943_v22, %v941_v21  ;;  %v950_v36 = vmul.f32 %v507_v23, %v395_v34  ;;  %v470_v38 = vadd.f32 %v454_v18, %v909_v35 }
 0x109   : > { %v527_v37 = vmul.f32 %v511_v27, %v399_v26  ;;  %v738_v41 = vpop.eup %737  ;;  %v482_v42 = vmul.f32 0.7978846, %v466_v32  ;;  %v468_v43 = vadd.f32 %v452_v3, %v895_v17  ;;  %v472_v28 = vadd.f32 %v456_v19, %v914_v40 }
 0x10a   : > { %v740_v45 = vpop.eup %739  ;;  %v486_v46 = vmul.f32 0.7978846, %v470_v38  ;;  %v513_v51 = vadd.f32 1.0, %v738_v41  ;;  %v394_v53 = vmul.f32 0.5, %v851_v29  ;;  %v401_v54 = vmul.f32 0.5, %v883_v0 }
 0x10b   : > { %v541_v39 = vpack.c.bf16 %v527_v37, %v950_v36  ;;  %753 = vtanh.f32 %v482_v42  ;;  %v484_v48 = vmul.f32 0.7978846, %v468_v43  ;;  %v488_v49 = vmul.f32 0.7978846, %v472_v28 }
 0x10c   : > { %755 = vtanh.f32 %v486_v46  ;;  %v515_v55 = vadd.f32 1.0, %v740_v45  ;;  %v405_v59 = vmul.f32 0.5, %v901_v24  ;;  %v398_v56 = vmul.f32 0.5, %v865_v44 }
 0x10d   : > { %v742_v50 = vpop.eup %741  ;;  %757 = vtanh.f32 %v484_v48  ;;  %v403_v61 = vmul.f32 0.5, %v887_v6  ;;  %v407_v62 = vmul.f32 0.5, %v905_v30  ;;  %v396_v2 = vmul.f32 0.5, %v854_v33 }
 0x10e   : > { %v744_v52 = vpop.eup %743  ;;  %v506_v58 = vadd.f32 1.0, %v742_v50  ;;  %759 = vtanh.f32 %v488_v49  ;;  %v529_v0 = vmul.f32 %v513_v51, %v401_v54  ;;  %v400_v7 = vmul.f32 0.5, %v869_v47 }
 0x10f   : > { %v746_v57 = vpop.eup %745  ;;  %v517_v60 = vadd.f32 1.0, %v744_v52  ;;  %v531_v24 = vmul.f32 %v515_v55, %v403_v61  ;;  %v402_v47 = vmul.f32 0.5, %v891_v12  ;;  %v406_v20 = vmul.f32 0.5, %v909_v35 }
 0x110   : > { %v748_v25 = vpop.eup %747  ;;  %v519_v63 = vadd.f32 1.0, %v746_v57  ;;  %v522_v9 = vmul.f32 %v506_v58, %v394_v53  ;;  %v404_v23 = vmul.f32 0.5, %v895_v17  ;;  %v408_v32 = vmul.f32 0.5, %v914_v40  ;;  %v551_v17 = vpop.permute.xlu0 %550 }
 0x111   : > { %v750_v1 = vpop.eup %749  ;;  %v510_v29 = vadd.f32 1.0, %v748_v25  ;;  %v533_v3 = vmul.f32 %v517_v60, %v405_v59 }
 0x112   : > { %v752_v5 = vpop.eup %751  ;;  %v508_v4 = vadd.f32 1.0, %v750_v1  ;;  %v535_v8 = vmul.f32 %v519_v63, %v407_v62 }
 0x113   : > { %v526_v10 = vmul.f32 %v510_v29, %v398_v56  ;;  %v512_v44 = vadd.f32 1.0, %v752_v5  ;;  %v543_v11 = vpack.c.bf16 %v533_v3, %v529_v0 }
 0x114   : > { %v545_v6 = vpack.c.bf16 %v535_v8, %v531_v24  ;;  %v524_v30 = vmul.f32 %v508_v4, %v396_v2 }
 0x115   : > { %v540_v13 = vpack.c.bf16 %v526_v10, %v522_v9  ;;  %v528_v14 = vmul.f32 %v512_v44, %v400_v7  ;;  %v754_v15 = vpop.eup %753 }
 0x116   : > { %v756_v16 = vpop.eup %755  ;;  %v514_v18 = vadd.f32 1.0, %v754_v15 }
 0x117   : > { %557 = vmatprep.subr.bf16.mxu0 %v540_v13  ;;  %v542_v33 = vpack.c.bf16 %v528_v14, %v524_v30  ;;  %v758_v19 = vpop.eup %757  ;;  %v518_v21 = vadd.f32 1.0, %v756_v16 }
 0x118   : > { %558 = vmatpush1.bf16.msra.mxu0 %v539_v31  ;;  %v760_v22 = vpop.eup %759  ;;  %v516_v34 = vadd.f32 1.0, %v758_v19  ;;  %v530_v26 = vmul.f32 %v514_v18, %v402_v47  ;;  %v537_v31 = vld [vmem:[%s982_s3] sm:$0xff] }
 0x119   : > { %598 = vmatprep.subr.bf16.mxu1 %v542_v33  ;;  %v534_v27 = vmul.f32 %v518_v21, %v406_v20  ;;  %v520_v36 = vadd.f32 1.0, %v760_v22  ;;  %v538_v41 = vpack.c.bf16 %v537_v31, %v537_v31 }
 0x11a   : > { %599 = vmatpush1.bf16.msra.mxu1 %v541_v39  ;;  %v532_v37 = vmul.f32 %v516_v34, %v404_v23 }
 0x11b   : > { %v544_v12 = vpack.c.bf16 %v534_v27, %v530_v26  ;;  %v536_v35 = vmul.f32 %v520_v36, %v408_v32 }
 0x11d   : > { %559 = vmatprep.subr.bf16.mxu0 %v544_v12  ;;  %v546_v38 = vpack.c.bf16 %v536_v35, %v532_v37 }
 0x11e   : > { %560 = vmatpush1.bf16.msra.mxu0 %v543_v11 }
 0x11f   : > { %600 = vmatprep.subr.bf16.mxu1 %v546_v38 }
 0x120   : > { %601 = vmatpush1.bf16.msra.mxu1 %v545_v6 }
 0x121   : > { %714 = vmatmul.mubr.msk.bf16.vlgmr.msra.gmra.mrb[8].mxu0 %vm553_vm2, %v538_v41 }
 0x123   : > { %715 = vmatmul.mubr.msk.bf16.vlgmr.msra.gmra.mrb[8].mxu1 %vm553_vm2, %v538_v41 }
 0x1f4   : > { %v591_v40 = vpop.f32.mrb[8].mxu0 }
 0x1f5   : > { %v592_v42 = vadd.f32 %v591_v40, %v551_v17  ;;  %v593_v43 = vpop.f32.mrb[9].mxu0 }
 0x1f6   : > { %v632_v28 = vpop.f32.mrb[8].mxu1  ;;  %v594_v45 = vadd.f32 %v593_v43, %v551_v17  ;;  %v595_v39 = vpop.f32.mrb[10].mxu0 }
 0x1f7   : > { %639 = vst [vmem:[%s226_s24] sm:$0xff] %v592_v42  ;;  %v633_v46 = vadd.f32 %v632_v28, %v551_v17  ;;  %v634_v48 = vpop.f32.mrb[9].mxu1  ;;  %v596_v49 = vpop.f32.mrb[11].mxu0 }
 0x1f8   : > { %640 = vst [vmem:[%s226_s24 + $0x8] sm:$0xff] %v594_v45  ;;  %v635_v50 = vadd.f32 %v634_v48, %v551_v17  ;;  %v636_v51 = vpop.f32.mrb[10].mxu1 }
 0x1f9   : > { %641 = vst [vmem:[%s226_s24 + $0x10] sm:$0xff] %v633_v46  ;;  %v637_v52 = vpop.f32.mrb[11].mxu1 }
 0x1fa   : > { %642 = vst [vmem:[%s226_s24 + $0x18] sm:$0xff] %v635_v50 }
 0x1fb PF: > { %s15_s18 = sadd.s32 1, %s767_s18  }
 0x1fc   : > { %p12_p4 = scmp.ge.s32.totalorder %s15_s18, 4  }
 0x1fe   :  { %14 = sbr.rel (!%p12_p4) target bundleno = 1 (0x1), region = 70 }

</bundles_post_ra>
